<compile_context>
chip_gen: v5e
topology: v5e:2x2
jax: 0.10.0
libtpu: 0.0.40
codegen_flags: <defaults>
</compile_context>

<pallas_src>
import functools
import math

import jax
import jax.numpy as jnp
from jax import lax
from jax.experimental import pallas as pl
from jax.experimental.pallas import tpu as pltpu


def _round_up(x, m):
    return ((x + m - 1) // m) * m


def _mha_fused_kernel(q_ref, k_ref, v_ref, mask_ref,
                      wq_ref, wk_ref, wv_ref, pwt_ref, pb_ref, gamma_ref, beta_ref,
                      out_ref, *maybe_attn_ref, n_heads, d_kp, d_vp, eps):
    attn_ref = maybe_attn_ref[0] if maybe_attn_ref else None
    cd = wq_ref.dtype                          # MXU compute dtype (bf16); accumulation stays f32

    b_blk, lq, d_model = q_ref.shape
    lk = k_ref.shape[1]

    # Flatten the batch block: (B_blk*L, d_model) — larger MXU M dim for the projections.
    q_all = q_ref[...].reshape(b_blk * lq, d_model)
    k_all = k_ref[...].reshape(b_blk * lk, d_model)
    v_all = v_ref[...].reshape(b_blk * lk, d_model)

    # All-heads / all-batches projections.  1/sqrt(d_k) is already folded into wq_ref.
    qs = jnp.dot(q_all.astype(cd), wq_ref[...], preferred_element_type=jnp.float32)
    ks = jnp.dot(k_all.astype(cd), wk_ref[...], preferred_element_type=jnp.float32)
    vs = jnp.dot(v_all.astype(cd), wv_ref[...], preferred_element_type=jnp.float32)

    contract_last = (((1,), (1,)), ((), ()))   # q @ k^T without materializing a transpose
    inv_nm1 = jnp.float32(1.0 / (d_model - 1))
    eps_f = jnp.float32(eps)

    for bi in range(b_blk):                    # static unroll: batch_block is small & static
        mask = mask_ref[bi]                    # (Lq, Lk) f32 additive mask (true runtime tensor)
        proj_acc = jnp.zeros((lq, d_model), jnp.float32)

        for h in range(n_heads):               # static unroll; all slices 128-lane aligned
            qh = qs[bi * lq:(bi + 1) * lq, h * d_kp:(h + 1) * d_kp].astype(cd)
            kh = ks[bi * lk:(bi + 1) * lk, h * d_kp:(h + 1) * d_kp].astype(cd)
            vh = vs[bi * lk:(bi + 1) * lk, h * d_vp:(h + 1) * d_vp].astype(cd)

            s = lax.dot_general(qh, kh, contract_last,
                                preferred_element_type=jnp.float32)   # (Lq, Lk) f32
            s = s + mask
            s = s - jnp.max(s, axis=-1, keepdims=True)
            e = jnp.exp(s)
            a = e * pl.reciprocal(jnp.sum(e, axis=-1, keepdims=True), approx=True)
            if attn_ref is not None:
                attn_ref[h, bi] = a.astype(attn_ref.dtype)

            # Incremental output projection: bounds live values to one (Lq, d_model) accumulator.
            ho = jnp.dot(a.astype(cd), vh, preferred_element_type=jnp.float32)   # (Lq, d_vp)
            proj_acc = proj_acc + jnp.dot(ho.astype(cd),
                                          pwt_ref[h * d_vp:(h + 1) * d_vp, :],
                                          preferred_element_type=jnp.float32)

        # Residual + proj bias, then the module's unbiased-std layer norm (eps added to std).
        z = q_ref[bi] + proj_acc + pb_ref[...]                # (Lq, d_model) f32
        mean = jnp.mean(z, axis=-1, keepdims=True)
        diff = z - mean
        var_unbiased = jnp.sum(diff * diff, axis=-1, keepdims=True) * inv_nm1
        inv = 1.0 / (jnp.sqrt(var_unbiased) + eps_f)          # exact reciprocal (layer-norm path)
        out_ref[bi] = gamma_ref[...] * (diff * inv) + beta_ref[...]


def _vmem_ceiling_bytes():
    """Per-generation usable VMEM ceiling (v7x: 64 MiB physical; v5e/v6e: 128 MiB)."""
    try:
        cap = int(pltpu.get_tpu_info().vmem_capacity_bytes)
    except Exception:
        cap = 64 << 20                          # conservative (v7x-sized) fallback
    return min(int(cap * 0.85), 100 << 20)


def multi_head_attention(q, k, v, attn_mask, params, *, eps=1e-3, return_attn=True,
                         attn_dtype=jnp.bfloat16, compute_dtype=jnp.bfloat16,
                         batch_block=None, single_buffer_weights=False):
    """Forward pass of MultiHeadAttention.

    Returns (out, attn) like the PyTorch module; attn has shape (n_heads*b, Lq, Lk), head-major
    (pass attn_dtype=jnp.float32 for exact dtype parity with torch).  If return_attn=False only
    `out` is returned (saves the dominant attn HBM writeback — recommended in production).
    """
    wq, wk, wv, proj_w, proj_b, gamma, beta = params
    n_heads, d_model, d_k = wq.shape
    d_v = wv.shape[-1]
    b, Lq, _ = q.shape
    Lk = k.shape[1]

    # Per-head dims padded up to the 128-lane boundary (exact: padded lanes/rows are zero).
    d_kp = _round_up(d_k, 128)
    d_vp = _round_up(d_v, 128)

    # Batch block: target ~128 rows per projection matmul (MXU M tile), must divide b.
    if batch_block is None:
        target = max(1, 128 // max(Lq, 1))
        batch_block = 1
        for cand in range(1, min(b, target) + 1):
            if b % cand == 0:
                batch_block = cand
    assert b % batch_block == 0, "batch_block must divide the batch size"
    n_steps = b // batch_block

    # One-time host-side weight repacking:
    #   * per-head weights concatenated on the feature axis, each head zero-padded to d_kp/d_vp,
    #   * 1/sqrt(d_k) folded into w_q,
    #   * output projection pre-transposed (no in-kernel transpose), rows padded per head,
    #   * cast once to the MXU dtype.
    scale = 1.0 / math.sqrt(d_k)

    def _pack_qkv(w, d_head, d_head_p, scl):
        w = jnp.transpose(w, (1, 0, 2)) * jnp.float32(scl)       # (d_model, H, d_head)
        w = jnp.pad(w, ((0, 0), (0, 0), (0, d_head_p - d_head)))
        return w.reshape(d_model, n_heads * d_head_p).astype(compute_dtype)

    wq_all = _pack_qkv(wq, d_k, d_kp, scale)
    wk_all = _pack_qkv(wk, d_k, d_kp, 1.0)
    wv_all = _pack_qkv(wv, d_v, d_vp, 1.0)

    pwt = proj_w.T.reshape(n_heads, d_v, d_model)                # (H, d_v, d_model)
    pwt = jnp.pad(pwt, ((0, 0), (0, d_vp - d_v), (0, 0)))
    pwt = pwt.reshape(n_heads * d_vp, d_model).astype(compute_dtype)

    proj_b2 = proj_b.reshape(1, d_model).astype(jnp.float32)
    gamma2 = gamma.reshape(1, d_model).astype(jnp.float32)
    beta2 = beta.reshape(1, d_model).astype(jnp.float32)

    kernel = functools.partial(_mha_fused_kernel, n_heads=n_heads, d_kp=d_kp, d_vp=d_vp, eps=eps)

    def _weight_spec(shape):
        kwargs = {}
        if single_buffer_weights:
            # v7x: constant-index weight blocks never change -> one pipeline buffer is enough.
            kwargs["pipeline_mode"] = pl.Buffered(1)
        return pl.BlockSpec(shape, lambda bi, _s=len(shape): (0,) * _s, **kwargs)

    in_specs = [
        pl.BlockSpec((batch_block, Lq, d_model), lambda bi: (bi, 0, 0)),   # q (also residual)
        pl.BlockSpec((batch_block, Lk, d_model), lambda bi: (bi, 0, 0)),   # k
        pl.BlockSpec((batch_block, Lk, d_model), lambda bi: (bi, 0, 0)),   # v
        pl.BlockSpec((batch_block, Lq, Lk),      lambda bi: (bi, 0, 0)),   # attn_mask
        _weight_spec((d_model, n_heads * d_kp)),                           # w_q (scale folded)
        _weight_spec((d_model, n_heads * d_kp)),                           # w_k
        _weight_spec((d_model, n_heads * d_vp)),                           # w_v
        _weight_spec((n_heads * d_vp, d_model)),                           # proj weight^T
        _weight_spec((1, d_model)),                                        # proj bias
        _weight_spec((1, d_model)),                                        # gamma
        _weight_spec((1, d_model)),                                        # beta
    ]

    out_spec = pl.BlockSpec((batch_block, Lq, d_model), lambda bi: (bi, 0, 0))
    out_shape = jax.ShapeDtypeStruct((b, Lq, d_model), jnp.float32)
    if return_attn:
        out_specs = [out_spec,
                     pl.BlockSpec((n_heads, batch_block, Lq, Lk), lambda bi: (0, bi, 0, 0))]
        out_shapes = [out_shape,
                      jax.ShapeDtypeStruct((n_heads, b, Lq, Lk), attn_dtype)]
    else:
        out_specs = out_spec
        out_shapes = out_shape

    # Explicit VMEM limit derived from the block sizes (defaults are 16/32 MiB and would trip
    # long before physical VMEM once blocks grow); clamped to the per-generation ceiling.
    it_c = jnp.dtype(compute_dtype).itemsize
    it_a = jnp.dtype(attn_dtype).itemsize
    act_blk = batch_block * (Lq + 2 * Lk) * d_model * 4
    mask_blk = batch_block * Lq * Lk * 4
    out_blk = batch_block * Lq * d_model * 4
    attn_blk = n_heads * batch_block * Lq * Lk * it_a if return_attn else 0
    w_bytes = (2 * d_model * n_heads * d_kp + 2 * d_model * n_heads * d_vp) * it_c \
        + 3 * d_model * 4
    interm = batch_block * (Lq + 2 * Lk) * n_heads * max(d_kp, d_vp) * 4   # qs/ks/vs (f32)
    est = (2 * (act_blk + mask_blk + out_blk + attn_blk)
           + (1 if single_buffer_weights else 2) * w_bytes
           + 2 * interm)
    vmem_limit = int(min(max(est, 32 << 20), _vmem_ceiling_bytes()))

    results = pl.pallas_call(
        kernel,
        grid=(n_steps,),
        in_specs=in_specs,
        out_specs=out_specs,
        out_shape=out_shapes,
        compiler_params=pltpu.CompilerParams(
            dimension_semantics=("parallel",),
            vmem_limit_bytes=vmem_limit),
    )(q, k, v, attn_mask, wq_all, wk_all, wv_all, pwt, proj_b2, gamma2, beta2)

    if return_attn:
        out, attn = results
        return out, attn.reshape(n_heads * b, Lq, Lk)   # head-major, matches torch layout
    return results


def init_params(key, d_k, d_v, d_model, n_heads):
    k1, k2, k3, k4, k5 = jax.random.split(key, 5)
    # xavier_normal_ for per-head weights: std = sqrt(2 / (fan_in + fan_out))
    std_qk = math.sqrt(2.0 / (d_model + d_k))
    std_v = math.sqrt(2.0 / (d_model + d_v))
    wq = jax.random.normal(k1, (n_heads, d_model, d_k), jnp.float32) * std_qk
    wk = jax.random.normal(k2, (n_heads, d_model, d_k), jnp.float32) * std_qk
    wv = jax.random.normal(k3, (n_heads, d_model, d_v), jnp.float32) * std_v
    # orthogonal init for proj weight, PyTorch Linear layout (d_model, n_heads*d_v)
    a = jax.random.normal(k4, (n_heads * d_v, d_model), jnp.float32)
    qmat, _ = jnp.linalg.qr(a)
    proj_w = qmat.T
    bound = 1.0 / math.sqrt(n_heads * d_v)
    proj_b = jax.random.uniform(k5, (d_model,), jnp.float32, -bound, bound)
    gamma = jnp.ones((d_model,), jnp.float32)
    beta = jnp.zeros((d_model,), jnp.float32)
    return (wq, wk, wv, proj_w, proj_b, gamma, beta)


def _reference(q, k, v, attn_mask, params, *, eps=1e-3):
    """Pure-JAX f32 reference mirroring the PyTorch forward (eval mode)."""
    wq, wk, wv, proj_w, proj_b, gamma, beta = params
    n_heads, d_model, d_k = wq.shape
    d_v = wv.shape[-1]
    b, Lq, _ = q.shape
    Lk = k.shape[1]
    qs = jnp.einsum('bqm,hmd->hbqd', q, wq)
    ks = jnp.einsum('bkm,hmd->hbkd', k, wk)
    vs = jnp.einsum('bkm,hmd->hbkd', v, wv)
    scores = jnp.einsum('hbqd,hbkd->hbqk', qs, ks) / math.sqrt(d_k) + attn_mask[None]
    attn = jax.nn.softmax(scores, axis=-1)
    heads = jnp.einsum('hbqk,hbkd->bqhd', attn, vs).reshape(b, Lq, n_heads * d_v)
    z = q + (heads @ proj_w.T + proj_b)
    mean = jnp.mean(z, axis=-1, keepdims=True)
    std = jnp.sqrt(jnp.sum((z - mean) ** 2, axis=-1, keepdims=True) / (d_model - 1))
    out = gamma * ((z - mean) / (std + eps)) + beta
    return out, attn.reshape(n_heads * b, Lq, Lk)


if __name__ == "__main__":
    d_k, d_v, d_model, n_heads = 16, 16, 32, 4
    b, Lq, Lk = 2, 8, 8

    root = jax.random.PRNGKey(0)
    kp, kq, kk, kv, km = jax.random.split(root, 5)
    params = init_params(kp, d_k, d_v, d_model, n_heads)

    q = jax.random.normal(kq, (b, Lq, d_model), jnp.float32)
    k = jax.random.normal(kk, (b, Lk, d_model), jnp.float32)
    v = jax.random.normal(kv, (b, Lk, d_model), jnp.float32)
    attn_mask = 0.1 * jax.random.normal(km, (b, Lq, Lk), jnp.float32)

    out, attn = multi_head_attention(q, k, v, attn_mask, params)
    jax.block_until_ready((out, attn))
    assert out.shape == (b, Lq, d_model)
    assert attn.shape == (n_heads * b, Lq, Lk)

    # Sanity check vs a pure-JAX f32 reference (loose tolerance: bf16 MXU operands, bf16 attn
    # writeback, approx-recip softmax denominator).
    out_ref, attn_ref = _reference(q, k, v, attn_mask, params)
    assert float(jnp.max(jnp.abs(out - out_ref))) < 0.25
    assert float(jnp.max(jnp.abs(attn.astype(jnp.float32) - attn_ref))) < 0.05

    print("KERNEL_OK")
</pallas_src>

<mosaic_0001>
module attributes {stable_mosaic.version = 11 : i64} {
  func.func @_mha_fused_kernel(%arg0: i32, %arg1: memref<2x8x32xf32, #tpu.memory_space<vmem>>, %arg2: memref<2x8x32xf32, #tpu.memory_space<vmem>>, %arg3: memref<2x8x32xf32, #tpu.memory_space<vmem>>, %arg4: memref<2x8x8xf32, #tpu.memory_space<vmem>>, %arg5: memref<32x512xbf16, #tpu.memory_space<vmem>>, %arg6: memref<32x512xbf16, #tpu.memory_space<vmem>>, %arg7: memref<32x512xbf16, #tpu.memory_space<vmem>>, %arg8: memref<512x32xbf16, #tpu.memory_space<vmem>>, %arg9: memref<1x32xf32, #tpu.memory_space<vmem>>, %arg10: memref<1x32xf32, #tpu.memory_space<vmem>>, %arg11: memref<1x32xf32, #tpu.memory_space<vmem>>, %arg12: memref<2x8x32xf32, #tpu.memory_space<vmem>>, %arg13: memref<4x2x8x8xbf16, #tpu.memory_space<vmem>>) attributes {dimension_semantics = [#tpu.dimension_semantics<parallel>], iteration_bounds = array<i64: 1>, scalar_prefetch = 0 : i64, scratch_operands = 0 : i64, tpu.core_type = #tpu.core_type<tc>, window_params = [{transform_indices = @transform_0, window_bounds = array<i64: 2, 8, 32>}, {transform_indices = @transform_1, window_bounds = array<i64: 2, 8, 32>}, {transform_indices = @transform_2, window_bounds = array<i64: 2, 8, 32>}, {transform_indices = @transform_3, window_bounds = array<i64: 2, 8, 8>}, {pipeline_mode = #tpu.pipeline_mode<synchronous>, transform_indices = @transform_4, window_bounds = array<i64: 32, 512>}, {pipeline_mode = #tpu.pipeline_mode<synchronous>, transform_indices = @transform_5, window_bounds = array<i64: 32, 512>}, {pipeline_mode = #tpu.pipeline_mode<synchronous>, transform_indices = @transform_6, window_bounds = array<i64: 32, 512>}, {pipeline_mode = #tpu.pipeline_mode<synchronous>, transform_indices = @transform_7, window_bounds = array<i64: 512, 32>}, {pipeline_mode = #tpu.pipeline_mode<synchronous>, transform_indices = @transform_8, window_bounds = array<i64: 1, 32>}, {pipeline_mode = #tpu.pipeline_mode<synchronous>, transform_indices = @transform_9, window_bounds = array<i64: 1, 32>}, {pipeline_mode = #tpu.pipeline_mode<synchronous>, transform_indices = @transform_10, window_bounds = array<i64: 1, 32>}, {transform_indices = @transform_11, window_bounds = array<i64: 2, 8, 32>}, {transform_indices = @transform_12, window_bounds = array<i64: 4, 2, 8, 8>}]} {
    %c0 = arith.constant 0 : index
    %c0_0 = arith.constant 0 : index
    %c0_1 = arith.constant 0 : index
    %0 = vector.load %arg1[%c0, %c0_0, %c0_1] : memref<2x8x32xf32, #tpu.memory_space<vmem>>, vector<2x8x32xf32>
    %1 = vector.shape_cast %0 : vector<2x8x32xf32> to vector<16x32xf32>
    %c0_2 = arith.constant 0 : index
    %c0_3 = arith.constant 0 : index
    %c0_4 = arith.constant 0 : index
    %2 = vector.load %arg2[%c0_2, %c0_3, %c0_4] : memref<2x8x32xf32, #tpu.memory_space<vmem>>, vector<2x8x32xf32>
    %3 = vector.shape_cast %2 : vector<2x8x32xf32> to vector<16x32xf32>
    %c0_5 = arith.constant 0 : index
    %c0_6 = arith.constant 0 : index
    %c0_7 = arith.constant 0 : index
    %4 = vector.load %arg3[%c0_5, %c0_6, %c0_7] : memref<2x8x32xf32, #tpu.memory_space<vmem>>, vector<2x8x32xf32>
    %5 = vector.shape_cast %4 : vector<2x8x32xf32> to vector<16x32xf32>
    %6 = arith.truncf %1 : vector<16x32xf32> to vector<16x32xbf16>
    %c0_8 = arith.constant 0 : index
    %c0_9 = arith.constant 0 : index
    %7 = vector.load %arg5[%c0_8, %c0_9] : memref<32x512xbf16, #tpu.memory_space<vmem>>, vector<32x512xbf16>
    %cst = arith.constant dense<0.000000e+00> : vector<16x512xf32>
    %8 = tpu.matmul %6, %7, %cst {dimension_numbers = #tpu.dot_dimension_numbers<[1], [0], [0], [1], [0, 0, 1, 1], [], []>} : vector<16x32xbf16>, vector<32x512xbf16>, vector<16x512xf32> -> vector<16x512xf32>
    %9 = arith.truncf %3 : vector<16x32xf32> to vector<16x32xbf16>
    %c0_10 = arith.constant 0 : index
    %c0_11 = arith.constant 0 : index
    %10 = vector.load %arg6[%c0_10, %c0_11] : memref<32x512xbf16, #tpu.memory_space<vmem>>, vector<32x512xbf16>
    %cst_12 = arith.constant dense<0.000000e+00> : vector<16x512xf32>
    %11 = tpu.matmul %9, %10, %cst_12 {dimension_numbers = #tpu.dot_dimension_numbers<[1], [0], [0], [1], [0, 0, 1, 1], [], []>} : vector<16x32xbf16>, vector<32x512xbf16>, vector<16x512xf32> -> vector<16x512xf32>
    %12 = arith.truncf %5 : vector<16x32xf32> to vector<16x32xbf16>
    %c0_13 = arith.constant 0 : index
    %c0_14 = arith.constant 0 : index
    %13 = vector.load %arg7[%c0_13, %c0_14] : memref<32x512xbf16, #tpu.memory_space<vmem>>, vector<32x512xbf16>
    %cst_15 = arith.constant dense<0.000000e+00> : vector<16x512xf32>
    %14 = tpu.matmul %12, %13, %cst_15 {dimension_numbers = #tpu.dot_dimension_numbers<[1], [0], [0], [1], [0, 0, 1, 1], [], []>} : vector<16x32xbf16>, vector<32x512xbf16>, vector<16x512xf32> -> vector<16x512xf32>
    %c0_16 = arith.constant 0 : index
    %c0_17 = arith.constant 0 : index
    %c0_18 = arith.constant 0 : index
    %15 = vector.load %arg4[%c0_16, %c0_17, %c0_18] : memref<2x8x8xf32, #tpu.memory_space<vmem>>, vector<1x8x8xf32>
    %16 = vector.shape_cast %15 : vector<1x8x8xf32> to vector<8x8xf32>
    %cst_19 = arith.constant 0.000000e+00 : f32
    %17 = vector.broadcast %cst_19 : f32 to vector<8x32xf32>
    %18 = vector.extract_strided_slice %8 {offsets = [0, 0], sizes = [8, 128], strides = [1, 1]} : vector<16x512xf32> to vector<8x128xf32>
    %19 = arith.truncf %18 : vector<8x128xf32> to vector<8x128xbf16>
    %20 = vector.extract_strided_slice %11 {offsets = [0, 0], sizes = [8, 128], strides = [1, 1]} : vector<16x512xf32> to vector<8x128xf32>
    %21 = arith.truncf %20 : vector<8x128xf32> to vector<8x128xbf16>
    %22 = vector.extract_strided_slice %14 {offsets = [0, 0], sizes = [8, 128], strides = [1, 1]} : vector<16x512xf32> to vector<8x128xf32>
    %23 = arith.truncf %22 : vector<8x128xf32> to vector<8x128xbf16>
    %cst_20 = arith.constant dense<0.000000e+00> : vector<8x8xf32>
    %24 = tpu.matmul %19, %21, %cst_20 {dimension_numbers = #tpu.dot_dimension_numbers<[1], [1], [0], [0], [0, 0, 1, 0], [], []>} : vector<8x128xbf16>, vector<8x128xbf16>, vector<8x8xf32> -> vector<8x8xf32>
    %25 = arith.addf %24, %16 : vector<8x8xf32>
    %cst_21 = arith.constant dense<0xFF800000> : vector<8xf32>
    %26 = vector.multi_reduction <maximumf>, %25, %cst_21 [1] : vector<8x8xf32> to vector<8xf32>
    %27 = vector.shape_cast %26 : vector<8xf32> to vector<8x1xf32>
    %28 = vector.broadcast %27 : vector<8x1xf32> to vector<8x8xf32>
    %29 = arith.subf %25, %28 : vector<8x8xf32>
    %30 = math.exp %29 : vector<8x8xf32>
    %cst_22 = arith.constant dense<0.000000e+00> : vector<8xf32>
    %31 = vector.multi_reduction <add>, %30, %cst_22 [1] : vector<8x8xf32> to vector<8xf32>
    %32 = vector.shape_cast %31 : vector<8xf32> to vector<8x1xf32>
    %33 = tpu.reciprocal %32 {approx = true} : vector<8x1xf32> -> vector<8x1xf32>
    %34 = vector.broadcast %33 : vector<8x1xf32> to vector<8x8xf32>
    %35 = arith.mulf %30, %34 : vector<8x8xf32>
    %36 = arith.truncf %35 : vector<8x8xf32> to vector<8x8xbf16>
    %c0_23 = arith.constant 0 : index
    %c0_24 = arith.constant 0 : index
    %c0_25 = arith.constant 0 : index
    %c0_26 = arith.constant 0 : index
    %37 = vector.load %arg13[%c0_23, %c0_24, %c0_25, %c0_26] : memref<4x2x8x8xbf16, #tpu.memory_space<vmem>>, vector<1x1x8x8xbf16>
    %38 = vector.shape_cast %37 : vector<1x1x8x8xbf16> to vector<8x8xbf16>
    %39 = vector.shape_cast %36 : vector<8x8xbf16> to vector<1x1x8x8xbf16>
    tpu.vector_store %arg13[%c0_23, %c0_24, %c0_25, %c0_26], %39 {strides = array<i32>} : memref<4x2x8x8xbf16, #tpu.memory_space<vmem>>, vector<1x1x8x8xbf16>,
    %40 = arith.truncf %35 : vector<8x8xf32> to vector<8x8xbf16>
    %cst_27 = arith.constant dense<0.000000e+00> : vector<8x128xf32>
    %41 = tpu.matmul %40, %23, %cst_27 {dimension_numbers = #tpu.dot_dimension_numbers<[1], [0], [0], [1], [0, 0, 1, 1], [], []>} : vector<8x8xbf16>, vector<8x128xbf16>, vector<8x128xf32> -> vector<8x128xf32>
    %42 = arith.truncf %41 : vector<8x128xf32> to vector<8x128xbf16>
    %c0_28 = arith.constant 0 : index
    %c0_29 = arith.constant 0 : index
    %43 = vector.load %arg8[%c0_28, %c0_29] : memref<512x32xbf16, #tpu.memory_space<vmem>>, vector<128x32xbf16>
    %cst_30 = arith.constant dense<0.000000e+00> : vector<8x32xf32>
    %44 = tpu.matmul %42, %43, %cst_30 {dimension_numbers = #tpu.dot_dimension_numbers<[1], [0], [0], [1], [0, 0, 1, 1], [], []>} : vector<8x128xbf16>, vector<128x32xbf16>, vector<8x32xf32> -> vector<8x32xf32>
    %45 = arith.addf %17, %44 : vector<8x32xf32>
    %46 = vector.extract_strided_slice %8 {offsets = [0, 128], sizes = [8, 128], strides = [1, 1]} : vector<16x512xf32> to vector<8x128xf32>
    %47 = arith.truncf %46 : vector<8x128xf32> to vector<8x128xbf16>
    %48 = vector.extract_strided_slice %11 {offsets = [0, 128], sizes = [8, 128], strides = [1, 1]} : vector<16x512xf32> to vector<8x128xf32>
    %49 = arith.truncf %48 : vector<8x128xf32> to vector<8x128xbf16>
    %50 = vector.extract_strided_slice %14 {offsets = [0, 128], sizes = [8, 128], strides = [1, 1]} : vector<16x512xf32> to vector<8x128xf32>
    %51 = arith.truncf %50 : vector<8x128xf32> to vector<8x128xbf16>
    %cst_31 = arith.constant dense<0.000000e+00> : vector<8x8xf32>
    %52 = tpu.matmul %47, %49, %cst_31 {dimension_numbers = #tpu.dot_dimension_numbers<[1], [1], [0], [0], [0, 0, 1, 0], [], []>} : vector<8x128xbf16>, vector<8x128xbf16>, vector<8x8xf32> -> vector<8x8xf32>
    %53 = arith.addf %52, %16 : vector<8x8xf32>
    %cst_32 = arith.constant dense<0xFF800000> : vector<8xf32>
    %54 = vector.multi_reduction <maximumf>, %53, %cst_32 [1] : vector<8x8xf32> to vector<8xf32>
    %55 = vector.shape_cast %54 : vector<8xf32> to vector<8x1xf32>
    %56 = vector.broadcast %55 : vector<8x1xf32> to vector<8x8xf32>
    %57 = arith.subf %53, %56 : vector<8x8xf32>
    %58 = math.exp %57 : vector<8x8xf32>
    %cst_33 = arith.constant dense<0.000000e+00> : vector<8xf32>
    %59 = vector.multi_reduction <add>, %58, %cst_33 [1] : vector<8x8xf32> to vector<8xf32>
    %60 = vector.shape_cast %59 : vector<8xf32> to vector<8x1xf32>
    %61 = tpu.reciprocal %60 {approx = true} : vector<8x1xf32> -> vector<8x1xf32>
    %62 = vector.broadcast %61 : vector<8x1xf32> to vector<8x8xf32>
    %63 = arith.mulf %58, %62 : vector<8x8xf32>
    %64 = arith.truncf %63 : vector<8x8xf32> to vector<8x8xbf16>
    %c1 = arith.constant 1 : index
    %c0_34 = arith.constant 0 : index
    %c0_35 = arith.constant 0 : index
    %c0_36 = arith.constant 0 : index
    %65 = vector.load %arg13[%c1, %c0_34, %c0_35, %c0_36] : memref<4x2x8x8xbf16, #tpu.memory_space<vmem>>, vector<1x1x8x8xbf16>
    %66 = vector.shape_cast %65 : vector<1x1x8x8xbf16> to vector<8x8xbf16>
    %67 = vector.shape_cast %64 : vector<8x8xbf16> to vector<1x1x8x8xbf16>
    tpu.vector_store %arg13[%c1, %c0_34, %c0_35, %c0_36], %67 {strides = array<i32>} : memref<4x2x8x8xbf16, #tpu.memory_space<vmem>>, vector<1x1x8x8xbf16>,
    %68 = arith.truncf %63 : vector<8x8xf32> to vector<8x8xbf16>
    %cst_37 = arith.constant dense<0.000000e+00> : vector<8x128xf32>
    %69 = tpu.matmul %68, %51, %cst_37 {dimension_numbers = #tpu.dot_dimension_numbers<[1], [0], [0], [1], [0, 0, 1, 1], [], []>} : vector<8x8xbf16>, vector<8x128xbf16>, vector<8x128xf32> -> vector<8x128xf32>
    %70 = arith.truncf %69 : vector<8x128xf32> to vector<8x128xbf16>
    %c128 = arith.constant 128 : index
    %c0_38 = arith.constant 0 : index
    %71 = vector.load %arg8[%c128, %c0_38] : memref<512x32xbf16, #tpu.memory_space<vmem>>, vector<128x32xbf16>
    %cst_39 = arith.constant dense<0.000000e+00> : vector<8x32xf32>
    %72 = tpu.matmul %70, %71, %cst_39 {dimension_numbers = #tpu.dot_dimension_numbers<[1], [0], [0], [1], [0, 0, 1, 1], [], []>} : vector<8x128xbf16>, vector<128x32xbf16>, vector<8x32xf32> -> vector<8x32xf32>
    %73 = arith.addf %45, %72 : vector<8x32xf32>
    %74 = vector.extract_strided_slice %8 {offsets = [0, 256], sizes = [8, 128], strides = [1, 1]} : vector<16x512xf32> to vector<8x128xf32>
    %75 = arith.truncf %74 : vector<8x128xf32> to vector<8x128xbf16>
    %76 = vector.extract_strided_slice %11 {offsets = [0, 256], sizes = [8, 128], strides = [1, 1]} : vector<16x512xf32> to vector<8x128xf32>
    %77 = arith.truncf %76 : vector<8x128xf32> to vector<8x128xbf16>
    %78 = vector.extract_strided_slice %14 {offsets = [0, 256], sizes = [8, 128], strides = [1, 1]} : vector<16x512xf32> to vector<8x128xf32>
    %79 = arith.truncf %78 : vector<8x128xf32> to vector<8x128xbf16>
    %cst_40 = arith.constant dense<0.000000e+00> : vector<8x8xf32>
    %80 = tpu.matmul %75, %77, %cst_40 {dimension_numbers = #tpu.dot_dimension_numbers<[1], [1], [0], [0], [0, 0, 1, 0], [], []>} : vector<8x128xbf16>, vector<8x128xbf16>, vector<8x8xf32> -> vector<8x8xf32>
    %81 = arith.addf %80, %16 : vector<8x8xf32>
    %cst_41 = arith.constant dense<0xFF800000> : vector<8xf32>
    %82 = vector.multi_reduction <maximumf>, %81, %cst_41 [1] : vector<8x8xf32> to vector<8xf32>
    %83 = vector.shape_cast %82 : vector<8xf32> to vector<8x1xf32>
    %84 = vector.broadcast %83 : vector<8x1xf32> to vector<8x8xf32>
    %85 = arith.subf %81, %84 : vector<8x8xf32>
    %86 = math.exp %85 : vector<8x8xf32>
    %cst_42 = arith.constant dense<0.000000e+00> : vector<8xf32>
    %87 = vector.multi_reduction <add>, %86, %cst_42 [1] : vector<8x8xf32> to vector<8xf32>
    %88 = vector.shape_cast %87 : vector<8xf32> to vector<8x1xf32>
    %89 = tpu.reciprocal %88 {approx = true} : vector<8x1xf32> -> vector<8x1xf32>
    %90 = vector.broadcast %89 : vector<8x1xf32> to vector<8x8xf32>
    %91 = arith.mulf %86, %90 : vector<8x8xf32>
    %92 = arith.truncf %91 : vector<8x8xf32> to vector<8x8xbf16>
    %c2 = arith.constant 2 : index
    %c0_43 = arith.constant 0 : index
    %c0_44 = arith.constant 0 : index
    %c0_45 = arith.constant 0 : index
    %93 = vector.load %arg13[%c2, %c0_43, %c0_44, %c0_45] : memref<4x2x8x8xbf16, #tpu.memory_space<vmem>>, vector<1x1x8x8xbf16>
    %94 = vector.shape_cast %93 : vector<1x1x8x8xbf16> to vector<8x8xbf16>
    %95 = vector.shape_cast %92 : vector<8x8xbf16> to vector<1x1x8x8xbf16>
    tpu.vector_store %arg13[%c2, %c0_43, %c0_44, %c0_45], %95 {strides = array<i32>} : memref<4x2x8x8xbf16, #tpu.memory_space<vmem>>, vector<1x1x8x8xbf16>,
    %96 = arith.truncf %91 : vector<8x8xf32> to vector<8x8xbf16>
    %cst_46 = arith.constant dense<0.000000e+00> : vector<8x128xf32>
    %97 = tpu.matmul %96, %79, %cst_46 {dimension_numbers = #tpu.dot_dimension_numbers<[1], [0], [0], [1], [0, 0, 1, 1], [], []>} : vector<8x8xbf16>, vector<8x128xbf16>, vector<8x128xf32> -> vector<8x128xf32>
    %98 = arith.truncf %97 : vector<8x128xf32> to vector<8x128xbf16>
    %c256 = arith.constant 256 : index
    %c0_47 = arith.constant 0 : index
    %99 = vector.load %arg8[%c256, %c0_47] : memref<512x32xbf16, #tpu.memory_space<vmem>>, vector<128x32xbf16>
    %cst_48 = arith.constant dense<0.000000e+00> : vector<8x32xf32>
    %100 = tpu.matmul %98, %99, %cst_48 {dimension_numbers = #tpu.dot_dimension_numbers<[1], [0], [0], [1], [0, 0, 1, 1], [], []>} : vector<8x128xbf16>, vector<128x32xbf16>, vector<8x32xf32> -> vector<8x32xf32>
    %101 = arith.addf %73, %100 : vector<8x32xf32>
    %102 = vector.extract_strided_slice %8 {offsets = [0, 384], sizes = [8, 128], strides = [1, 1]} : vector<16x512xf32> to vector<8x128xf32>
    %103 = arith.truncf %102 : vector<8x128xf32> to vector<8x128xbf16>
    %104 = vector.extract_strided_slice %11 {offsets = [0, 384], sizes = [8, 128], strides = [1, 1]} : vector<16x512xf32> to vector<8x128xf32>
    %105 = arith.truncf %104 : vector<8x128xf32> to vector<8x128xbf16>
    %106 = vector.extract_strided_slice %14 {offsets = [0, 384], sizes = [8, 128], strides = [1, 1]} : vector<16x512xf32> to vector<8x128xf32>
    %107 = arith.truncf %106 : vector<8x128xf32> to vector<8x128xbf16>
    %cst_49 = arith.constant dense<0.000000e+00> : vector<8x8xf32>
    %108 = tpu.matmul %103, %105, %cst_49 {dimension_numbers = #tpu.dot_dimension_numbers<[1], [1], [0], [0], [0, 0, 1, 0], [], []>} : vector<8x128xbf16>, vector<8x128xbf16>, vector<8x8xf32> -> vector<8x8xf32>
    %109 = arith.addf %108, %16 : vector<8x8xf32>
    %cst_50 = arith.constant dense<0xFF800000> : vector<8xf32>
    %110 = vector.multi_reduction <maximumf>, %109, %cst_50 [1] : vector<8x8xf32> to vector<8xf32>
    %111 = vector.shape_cast %110 : vector<8xf32> to vector<8x1xf32>
    %112 = vector.broadcast %111 : vector<8x1xf32> to vector<8x8xf32>
    %113 = arith.subf %109, %112 : vector<8x8xf32>
    %114 = math.exp %113 : vector<8x8xf32>
    %cst_51 = arith.constant dense<0.000000e+00> : vector<8xf32>
    %115 = vector.multi_reduction <add>, %114, %cst_51 [1] : vector<8x8xf32> to vector<8xf32>
    %116 = vector.shape_cast %115 : vector<8xf32> to vector<8x1xf32>
    %117 = tpu.reciprocal %116 {approx = true} : vector<8x1xf32> -> vector<8x1xf32>
    %118 = vector.broadcast %117 : vector<8x1xf32> to vector<8x8xf32>
    %119 = arith.mulf %114, %118 : vector<8x8xf32>
    %120 = arith.truncf %119 : vector<8x8xf32> to vector<8x8xbf16>
    %c3 = arith.constant 3 : index
    %c0_52 = arith.constant 0 : index
    %c0_53 = arith.constant 0 : index
    %c0_54 = arith.constant 0 : index
    %121 = vector.load %arg13[%c3, %c0_52, %c0_53, %c0_54] : memref<4x2x8x8xbf16, #tpu.memory_space<vmem>>, vector<1x1x8x8xbf16>
    %122 = vector.shape_cast %121 : vector<1x1x8x8xbf16> to vector<8x8xbf16>
    %123 = vector.shape_cast %120 : vector<8x8xbf16> to vector<1x1x8x8xbf16>
    tpu.vector_store %arg13[%c3, %c0_52, %c0_53, %c0_54], %123 {strides = array<i32>} : memref<4x2x8x8xbf16, #tpu.memory_space<vmem>>, vector<1x1x8x8xbf16>,
    %124 = arith.truncf %119 : vector<8x8xf32> to vector<8x8xbf16>
    %cst_55 = arith.constant dense<0.000000e+00> : vector<8x128xf32>
    %125 = tpu.matmul %124, %107, %cst_55 {dimension_numbers = #tpu.dot_dimension_numbers<[1], [0], [0], [1], [0, 0, 1, 1], [], []>} : vector<8x8xbf16>, vector<8x128xbf16>, vector<8x128xf32> -> vector<8x128xf32>
    %126 = arith.truncf %125 : vector<8x128xf32> to vector<8x128xbf16>
    %c384 = arith.constant 384 : index
    %c0_56 = arith.constant 0 : index
    %127 = vector.load %arg8[%c384, %c0_56] : memref<512x32xbf16, #tpu.memory_space<vmem>>, vector<128x32xbf16>
    %cst_57 = arith.constant dense<0.000000e+00> : vector<8x32xf32>
    %128 = tpu.matmul %126, %127, %cst_57 {dimension_numbers = #tpu.dot_dimension_numbers<[1], [0], [0], [1], [0, 0, 1, 1], [], []>} : vector<8x128xbf16>, vector<128x32xbf16>, vector<8x32xf32> -> vector<8x32xf32>
    %129 = arith.addf %101, %128 : vector<8x32xf32>
    %c0_58 = arith.constant 0 : index
    %c0_59 = arith.constant 0 : index
    %c0_60 = arith.constant 0 : index
    %130 = vector.load %arg1[%c0_58, %c0_59, %c0_60] : memref<2x8x32xf32, #tpu.memory_space<vmem>>, vector<1x8x32xf32>
    %131 = vector.shape_cast %130 : vector<1x8x32xf32> to vector<8x32xf32>
    %132 = arith.addf %131, %129 : vector<8x32xf32>
    %c0_61 = arith.constant 0 : index
    %c0_62 = arith.constant 0 : index
    %133 = vector.load %arg9[%c0_61, %c0_62] : memref<1x32xf32, #tpu.memory_space<vmem>>, vector<1x32xf32>
    %134 = vector.broadcast %133 : vector<1x32xf32> to vector<8x32xf32>
    %135 = arith.addf %132, %134 : vector<8x32xf32>
    %cst_63 = arith.constant dense<0.000000e+00> : vector<8xf32>
    %136 = vector.multi_reduction <add>, %135, %cst_63 [1] : vector<8x32xf32> to vector<8xf32>
    %137 = vector.shape_cast %136 : vector<8xf32> to vector<8x1xf32>
    %cst_64 = arith.constant 3.200000e+01 : f32
    %138 = vector.broadcast %cst_64 : f32 to vector<8x1xf32>
    %139 = arith.divf %137, %138 : vector<8x1xf32>
    %140 = vector.broadcast %139 : vector<8x1xf32> to vector<8x32xf32>
    %141 = arith.subf %135, %140 : vector<8x32xf32>
    %142 = arith.mulf %141, %141 : vector<8x32xf32>
    %cst_65 = arith.constant dense<0.000000e+00> : vector<8xf32>
    %143 = vector.multi_reduction <add>, %142, %cst_65 [1] : vector<8x32xf32> to vector<8xf32>
    %144 = vector.shape_cast %143 : vector<8xf32> to vector<8x1xf32>
    %cst_66 = arith.constant 0.0322580636 : f32
    %145 = vector.broadcast %cst_66 : f32 to vector<8x1xf32>
    %146 = arith.mulf %144, %145 : vector<8x1xf32>
    %147 = math.sqrt %146 : vector<8x1xf32>
    %cst_67 = arith.constant 1.000000e-03 : f32
    %148 = vector.broadcast %cst_67 : f32 to vector<8x1xf32>
    %149 = arith.addf %147, %148 : vector<8x1xf32>
    %cst_68 = arith.constant 1.000000e+00 : f32
    %150 = vector.broadcast %cst_68 : f32 to vector<8x1xf32>
    %151 = arith.divf %150, %149 : vector<8x1xf32>
    %c0_69 = arith.constant 0 : index
    %c0_70 = arith.constant 0 : index
    %152 = vector.load %arg10[%c0_69, %c0_70] : memref<1x32xf32, #tpu.memory_space<vmem>>, vector<1x32xf32>
    %153 = vector.broadcast %151 : vector<8x1xf32> to vector<8x32xf32>
    %154 = arith.mulf %141, %153 : vector<8x32xf32>
    %155 = vector.broadcast %152 : vector<1x32xf32> to vector<8x32xf32>
    %156 = arith.mulf %155, %154 : vector<8x32xf32>
    %c0_71 = arith.constant 0 : index
    %c0_72 = arith.constant 0 : index
    %157 = vector.load %arg11[%c0_71, %c0_72] : memref<1x32xf32, #tpu.memory_space<vmem>>, vector<1x32xf32>
    %158 = vector.broadcast %157 : vector<1x32xf32> to vector<8x32xf32>
    %159 = arith.addf %156, %158 : vector<8x32xf32>
    %c0_73 = arith.constant 0 : index
    %c0_74 = arith.constant 0 : index
    %c0_75 = arith.constant 0 : index
    %160 = vector.load %arg12[%c0_73, %c0_74, %c0_75] : memref<2x8x32xf32, #tpu.memory_space<vmem>>, vector<1x8x32xf32>
    %161 = vector.shape_cast %160 : vector<1x8x32xf32> to vector<8x32xf32>
    %162 = vector.shape_cast %159 : vector<8x32xf32> to vector<1x8x32xf32>
    tpu.vector_store %arg12[%c0_73, %c0_74, %c0_75], %162 {strides = array<i32>} : memref<2x8x32xf32, #tpu.memory_space<vmem>>, vector<1x8x32xf32>,
    %c1_76 = arith.constant 1 : index
    %c0_77 = arith.constant 0 : index
    %c0_78 = arith.constant 0 : index
    %163 = vector.load %arg4[%c1_76, %c0_77, %c0_78] : memref<2x8x8xf32, #tpu.memory_space<vmem>>, vector<1x8x8xf32>
    %164 = vector.shape_cast %163 : vector<1x8x8xf32> to vector<8x8xf32>
    %cst_79 = arith.constant 0.000000e+00 : f32
    %165 = vector.broadcast %cst_79 : f32 to vector<8x32xf32>
    %166 = vector.extract_strided_slice %8 {offsets = [8, 0], sizes = [8, 128], strides = [1, 1]} : vector<16x512xf32> to vector<8x128xf32>
    %167 = arith.truncf %166 : vector<8x128xf32> to vector<8x128xbf16>
    %168 = vector.extract_strided_slice %11 {offsets = [8, 0], sizes = [8, 128], strides = [1, 1]} : vector<16x512xf32> to vector<8x128xf32>
    %169 = arith.truncf %168 : vector<8x128xf32> to vector<8x128xbf16>
    %170 = vector.extract_strided_slice %14 {offsets = [8, 0], sizes = [8, 128], strides = [1, 1]} : vector<16x512xf32> to vector<8x128xf32>
    %171 = arith.truncf %170 : vector<8x128xf32> to vector<8x128xbf16>
    %cst_80 = arith.constant dense<0.000000e+00> : vector<8x8xf32>
    %172 = tpu.matmul %167, %169, %cst_80 {dimension_numbers = #tpu.dot_dimension_numbers<[1], [1], [0], [0], [0, 0, 1, 0], [], []>} : vector<8x128xbf16>, vector<8x128xbf16>, vector<8x8xf32> -> vector<8x8xf32>
    %173 = arith.addf %172, %164 : vector<8x8xf32>
    %cst_81 = arith.constant dense<0xFF800000> : vector<8xf32>
    %174 = vector.multi_reduction <maximumf>, %173, %cst_81 [1] : vector<8x8xf32> to vector<8xf32>
    %175 = vector.shape_cast %174 : vector<8xf32> to vector<8x1xf32>
    %176 = vector.broadcast %175 : vector<8x1xf32> to vector<8x8xf32>
    %177 = arith.subf %173, %176 : vector<8x8xf32>
    %178 = math.exp %177 : vector<8x8xf32>
    %cst_82 = arith.constant dense<0.000000e+00> : vector<8xf32>
    %179 = vector.multi_reduction <add>, %178, %cst_82 [1] : vector<8x8xf32> to vector<8xf32>
    %180 = vector.shape_cast %179 : vector<8xf32> to vector<8x1xf32>
    %181 = tpu.reciprocal %180 {approx = true} : vector<8x1xf32> -> vector<8x1xf32>
    %182 = vector.broadcast %181 : vector<8x1xf32> to vector<8x8xf32>
    %183 = arith.mulf %178, %182 : vector<8x8xf32>
    %184 = arith.truncf %183 : vector<8x8xf32> to vector<8x8xbf16>
    %c0_83 = arith.constant 0 : index
    %c1_84 = arith.constant 1 : index
    %c0_85 = arith.constant 0 : index
    %c0_86 = arith.constant 0 : index
    %185 = vector.load %arg13[%c0_83, %c1_84, %c0_85, %c0_86] : memref<4x2x8x8xbf16, #tpu.memory_space<vmem>>, vector<1x1x8x8xbf16>
    %186 = vector.shape_cast %185 : vector<1x1x8x8xbf16> to vector<8x8xbf16>
    %187 = vector.shape_cast %184 : vector<8x8xbf16> to vector<1x1x8x8xbf16>
    tpu.vector_store %arg13[%c0_83, %c1_84, %c0_85, %c0_86], %187 {strides = array<i32>} : memref<4x2x8x8xbf16, #tpu.memory_space<vmem>>, vector<1x1x8x8xbf16>,
    %188 = arith.truncf %183 : vector<8x8xf32> to vector<8x8xbf16>
    %cst_87 = arith.constant dense<0.000000e+00> : vector<8x128xf32>
    %189 = tpu.matmul %188, %171, %cst_87 {dimension_numbers = #tpu.dot_dimension_numbers<[1], [0], [0], [1], [0, 0, 1, 1], [], []>} : vector<8x8xbf16>, vector<8x128xbf16>, vector<8x128xf32> -> vector<8x128xf32>
    %190 = arith.truncf %189 : vector<8x128xf32> to vector<8x128xbf16>
    %c0_88 = arith.constant 0 : index
    %c0_89 = arith.constant 0 : index
    %191 = vector.load %arg8[%c0_88, %c0_89] : memref<512x32xbf16, #tpu.memory_space<vmem>>, vector<128x32xbf16>
    %cst_90 = arith.constant dense<0.000000e+00> : vector<8x32xf32>
    %192 = tpu.matmul %190, %191, %cst_90 {dimension_numbers = #tpu.dot_dimension_numbers<[1], [0], [0], [1], [0, 0, 1, 1], [], []>} : vector<8x128xbf16>, vector<128x32xbf16>, vector<8x32xf32> -> vector<8x32xf32>
    %193 = arith.addf %165, %192 : vector<8x32xf32>
    %194 = vector.extract_strided_slice %8 {offsets = [8, 128], sizes = [8, 128], strides = [1, 1]} : vector<16x512xf32> to vector<8x128xf32>
    %195 = arith.truncf %194 : vector<8x128xf32> to vector<8x128xbf16>
    %196 = vector.extract_strided_slice %11 {offsets = [8, 128], sizes = [8, 128], strides = [1, 1]} : vector<16x512xf32> to vector<8x128xf32>
    %197 = arith.truncf %196 : vector<8x128xf32> to vector<8x128xbf16>
    %198 = vector.extract_strided_slice %14 {offsets = [8, 128], sizes = [8, 128], strides = [1, 1]} : vector<16x512xf32> to vector<8x128xf32>
    %199 = arith.truncf %198 : vector<8x128xf32> to vector<8x128xbf16>
    %cst_91 = arith.constant dense<0.000000e+00> : vector<8x8xf32>
    %200 = tpu.matmul %195, %197, %cst_91 {dimension_numbers = #tpu.dot_dimension_numbers<[1], [1], [0], [0], [0, 0, 1, 0], [], []>} : vector<8x128xbf16>, vector<8x128xbf16>, vector<8x8xf32> -> vector<8x8xf32>
    %201 = arith.addf %200, %164 : vector<8x8xf32>
    %cst_92 = arith.constant dense<0xFF800000> : vector<8xf32>
    %202 = vector.multi_reduction <maximumf>, %201, %cst_92 [1] : vector<8x8xf32> to vector<8xf32>
    %203 = vector.shape_cast %202 : vector<8xf32> to vector<8x1xf32>
    %204 = vector.broadcast %203 : vector<8x1xf32> to vector<8x8xf32>
    %205 = arith.subf %201, %204 : vector<8x8xf32>
    %206 = math.exp %205 : vector<8x8xf32>
    %cst_93 = arith.constant dense<0.000000e+00> : vector<8xf32>
    %207 = vector.multi_reduction <add>, %206, %cst_93 [1] : vector<8x8xf32> to vector<8xf32>
    %208 = vector.shape_cast %207 : vector<8xf32> to vector<8x1xf32>
    %209 = tpu.reciprocal %208 {approx = true} : vector<8x1xf32> -> vector<8x1xf32>
    %210 = vector.broadcast %209 : vector<8x1xf32> to vector<8x8xf32>
    %211 = arith.mulf %206, %210 : vector<8x8xf32>
    %212 = arith.truncf %211 : vector<8x8xf32> to vector<8x8xbf16>
    %c1_94 = arith.constant 1 : index
    %c1_95 = arith.constant 1 : index
    %c0_96 = arith.constant 0 : index
    %c0_97 = arith.constant 0 : index
    %213 = vector.load %arg13[%c1_94, %c1_95, %c0_96, %c0_97] : memref<4x2x8x8xbf16, #tpu.memory_space<vmem>>, vector<1x1x8x8xbf16>
    %214 = vector.shape_cast %213 : vector<1x1x8x8xbf16> to vector<8x8xbf16>
    %215 = vector.shape_cast %212 : vector<8x8xbf16> to vector<1x1x8x8xbf16>
    tpu.vector_store %arg13[%c1_94, %c1_95, %c0_96, %c0_97], %215 {strides = array<i32>} : memref<4x2x8x8xbf16, #tpu.memory_space<vmem>>, vector<1x1x8x8xbf16>,
    %216 = arith.truncf %211 : vector<8x8xf32> to vector<8x8xbf16>
    %cst_98 = arith.constant dense<0.000000e+00> : vector<8x128xf32>
    %217 = tpu.matmul %216, %199, %cst_98 {dimension_numbers = #tpu.dot_dimension_numbers<[1], [0], [0], [1], [0, 0, 1, 1], [], []>} : vector<8x8xbf16>, vector<8x128xbf16>, vector<8x128xf32> -> vector<8x128xf32>
    %218 = arith.truncf %217 : vector<8x128xf32> to vector<8x128xbf16>
    %c128_99 = arith.constant 128 : index
    %c0_100 = arith.constant 0 : index
    %219 = vector.load %arg8[%c128_99, %c0_100] : memref<512x32xbf16, #tpu.memory_space<vmem>>, vector<128x32xbf16>
    %cst_101 = arith.constant dense<0.000000e+00> : vector<8x32xf32>
    %220 = tpu.matmul %218, %219, %cst_101 {dimension_numbers = #tpu.dot_dimension_numbers<[1], [0], [0], [1], [0, 0, 1, 1], [], []>} : vector<8x128xbf16>, vector<128x32xbf16>, vector<8x32xf32> -> vector<8x32xf32>
    %221 = arith.addf %193, %220 : vector<8x32xf32>
    %222 = vector.extract_strided_slice %8 {offsets = [8, 256], sizes = [8, 128], strides = [1, 1]} : vector<16x512xf32> to vector<8x128xf32>
    %223 = arith.truncf %222 : vector<8x128xf32> to vector<8x128xbf16>
    %224 = vector.extract_strided_slice %11 {offsets = [8, 256], sizes = [8, 128], strides = [1, 1]} : vector<16x512xf32> to vector<8x128xf32>
    %225 = arith.truncf %224 : vector<8x128xf32> to vector<8x128xbf16>
    %226 = vector.extract_strided_slice %14 {offsets = [8, 256], sizes = [8, 128], strides = [1, 1]} : vector<16x512xf32> to vector<8x128xf32>
    %227 = arith.truncf %226 : vector<8x128xf32> to vector<8x128xbf16>
    %cst_102 = arith.constant dense<0.000000e+00> : vector<8x8xf32>
    %228 = tpu.matmul %223, %225, %cst_102 {dimension_numbers = #tpu.dot_dimension_numbers<[1], [1], [0], [0], [0, 0, 1, 0], [], []>} : vector<8x128xbf16>, vector<8x128xbf16>, vector<8x8xf32> -> vector<8x8xf32>
    %229 = arith.addf %228, %164 : vector<8x8xf32>
    %cst_103 = arith.constant dense<0xFF800000> : vector<8xf32>
    %230 = vector.multi_reduction <maximumf>, %229, %cst_103 [1] : vector<8x8xf32> to vector<8xf32>
    %231 = vector.shape_cast %230 : vector<8xf32> to vector<8x1xf32>
    %232 = vector.broadcast %231 : vector<8x1xf32> to vector<8x8xf32>
    %233 = arith.subf %229, %232 : vector<8x8xf32>
    %234 = math.exp %233 : vector<8x8xf32>
    %cst_104 = arith.constant dense<0.000000e+00> : vector<8xf32>
    %235 = vector.multi_reduction <add>, %234, %cst_104 [1] : vector<8x8xf32> to vector<8xf32>
    %236 = vector.shape_cast %235 : vector<8xf32> to vector<8x1xf32>
    %237 = tpu.reciprocal %236 {approx = true} : vector<8x1xf32> -> vector<8x1xf32>
    %238 = vector.broadcast %237 : vector<8x1xf32> to vector<8x8xf32>
    %239 = arith.mulf %234, %238 : vector<8x8xf32>
    %240 = arith.truncf %239 : vector<8x8xf32> to vector<8x8xbf16>
    %c2_105 = arith.constant 2 : index
    %c1_106 = arith.constant 1 : index
    %c0_107 = arith.constant 0 : index
    %c0_108 = arith.constant 0 : index
    %241 = vector.load %arg13[%c2_105, %c1_106, %c0_107, %c0_108] : memref<4x2x8x8xbf16, #tpu.memory_space<vmem>>, vector<1x1x8x8xbf16>
    %242 = vector.shape_cast %241 : vector<1x1x8x8xbf16> to vector<8x8xbf16>
    %243 = vector.shape_cast %240 : vector<8x8xbf16> to vector<1x1x8x8xbf16>
    tpu.vector_store %arg13[%c2_105, %c1_106, %c0_107, %c0_108], %243 {strides = array<i32>} : memref<4x2x8x8xbf16, #tpu.memory_space<vmem>>, vector<1x1x8x8xbf16>,
    %244 = arith.truncf %239 : vector<8x8xf32> to vector<8x8xbf16>
    %cst_109 = arith.constant dense<0.000000e+00> : vector<8x128xf32>
    %245 = tpu.matmul %244, %227, %cst_109 {dimension_numbers = #tpu.dot_dimension_numbers<[1], [0], [0], [1], [0, 0, 1, 1], [], []>} : vector<8x8xbf16>, vector<8x128xbf16>, vector<8x128xf32> -> vector<8x128xf32>
    %246 = arith.truncf %245 : vector<8x128xf32> to vector<8x128xbf16>
    %c256_110 = arith.constant 256 : index
    %c0_111 = arith.constant 0 : index
    %247 = vector.load %arg8[%c256_110, %c0_111] : memref<512x32xbf16, #tpu.memory_space<vmem>>, vector<128x32xbf16>
    %cst_112 = arith.constant dense<0.000000e+00> : vector<8x32xf32>
    %248 = tpu.matmul %246, %247, %cst_112 {dimension_numbers = #tpu.dot_dimension_numbers<[1], [0], [0], [1], [0, 0, 1, 1], [], []>} : vector<8x128xbf16>, vector<128x32xbf16>, vector<8x32xf32> -> vector<8x32xf32>
    %249 = arith.addf %221, %248 : vector<8x32xf32>
    %250 = vector.extract_strided_slice %8 {offsets = [8, 384], sizes = [8, 128], strides = [1, 1]} : vector<16x512xf32> to vector<8x128xf32>
    %251 = arith.truncf %250 : vector<8x128xf32> to vector<8x128xbf16>
    %252 = vector.extract_strided_slice %11 {offsets = [8, 384], sizes = [8, 128], strides = [1, 1]} : vector<16x512xf32> to vector<8x128xf32>
    %253 = arith.truncf %252 : vector<8x128xf32> to vector<8x128xbf16>
    %254 = vector.extract_strided_slice %14 {offsets = [8, 384], sizes = [8, 128], strides = [1, 1]} : vector<16x512xf32> to vector<8x128xf32>
    %255 = arith.truncf %254 : vector<8x128xf32> to vector<8x128xbf16>
    %cst_113 = arith.constant dense<0.000000e+00> : vector<8x8xf32>
    %256 = tpu.matmul %251, %253, %cst_113 {dimension_numbers = #tpu.dot_dimension_numbers<[1], [1], [0], [0], [0, 0, 1, 0], [], []>} : vector<8x128xbf16>, vector<8x128xbf16>, vector<8x8xf32> -> vector<8x8xf32>
    %257 = arith.addf %256, %164 : vector<8x8xf32>
    %cst_114 = arith.constant dense<0xFF800000> : vector<8xf32>
    %258 = vector.multi_reduction <maximumf>, %257, %cst_114 [1] : vector<8x8xf32> to vector<8xf32>
    %259 = vector.shape_cast %258 : vector<8xf32> to vector<8x1xf32>
    %260 = vector.broadcast %259 : vector<8x1xf32> to vector<8x8xf32>
    %261 = arith.subf %257, %260 : vector<8x8xf32>
    %262 = math.exp %261 : vector<8x8xf32>
    %cst_115 = arith.constant dense<0.000000e+00> : vector<8xf32>
    %263 = vector.multi_reduction <add>, %262, %cst_115 [1] : vector<8x8xf32> to vector<8xf32>
    %264 = vector.shape_cast %263 : vector<8xf32> to vector<8x1xf32>
    %265 = tpu.reciprocal %264 {approx = true} : vector<8x1xf32> -> vector<8x1xf32>
    %266 = vector.broadcast %265 : vector<8x1xf32> to vector<8x8xf32>
    %267 = arith.mulf %262, %266 : vector<8x8xf32>
    %268 = arith.truncf %267 : vector<8x8xf32> to vector<8x8xbf16>
    %c3_116 = arith.constant 3 : index
    %c1_117 = arith.constant 1 : index
    %c0_118 = arith.constant 0 : index
    %c0_119 = arith.constant 0 : index
    %269 = vector.load %arg13[%c3_116, %c1_117, %c0_118, %c0_119] : memref<4x2x8x8xbf16, #tpu.memory_space<vmem>>, vector<1x1x8x8xbf16>
    %270 = vector.shape_cast %269 : vector<1x1x8x8xbf16> to vector<8x8xbf16>
    %271 = vector.shape_cast %268 : vector<8x8xbf16> to vector<1x1x8x8xbf16>
    tpu.vector_store %arg13[%c3_116, %c1_117, %c0_118, %c0_119], %271 {strides = array<i32>} : memref<4x2x8x8xbf16, #tpu.memory_space<vmem>>, vector<1x1x8x8xbf16>,
    %272 = arith.truncf %267 : vector<8x8xf32> to vector<8x8xbf16>
    %cst_120 = arith.constant dense<0.000000e+00> : vector<8x128xf32>
    %273 = tpu.matmul %272, %255, %cst_120 {dimension_numbers = #tpu.dot_dimension_numbers<[1], [0], [0], [1], [0, 0, 1, 1], [], []>} : vector<8x8xbf16>, vector<8x128xbf16>, vector<8x128xf32> -> vector<8x128xf32>
    %274 = arith.truncf %273 : vector<8x128xf32> to vector<8x128xbf16>
    %c384_121 = arith.constant 384 : index
    %c0_122 = arith.constant 0 : index
    %275 = vector.load %arg8[%c384_121, %c0_122] : memref<512x32xbf16, #tpu.memory_space<vmem>>, vector<128x32xbf16>
    %cst_123 = arith.constant dense<0.000000e+00> : vector<8x32xf32>
    %276 = tpu.matmul %274, %275, %cst_123 {dimension_numbers = #tpu.dot_dimension_numbers<[1], [0], [0], [1], [0, 0, 1, 1], [], []>} : vector<8x128xbf16>, vector<128x32xbf16>, vector<8x32xf32> -> vector<8x32xf32>
    %277 = arith.addf %249, %276 : vector<8x32xf32>
    %c1_124 = arith.constant 1 : index
    %c0_125 = arith.constant 0 : index
    %c0_126 = arith.constant 0 : index
    %278 = vector.load %arg1[%c1_124, %c0_125, %c0_126] : memref<2x8x32xf32, #tpu.memory_space<vmem>>, vector<1x8x32xf32>
    %279 = vector.shape_cast %278 : vector<1x8x32xf32> to vector<8x32xf32>
    %280 = arith.addf %279, %277 : vector<8x32xf32>
    %c0_127 = arith.constant 0 : index
    %c0_128 = arith.constant 0 : index
    %281 = vector.load %arg9[%c0_127, %c0_128] : memref<1x32xf32, #tpu.memory_space<vmem>>, vector<1x32xf32>
    %282 = vector.broadcast %281 : vector<1x32xf32> to vector<8x32xf32>
    %283 = arith.addf %280, %282 : vector<8x32xf32>
    %cst_129 = arith.constant dense<0.000000e+00> : vector<8xf32>
    %284 = vector.multi_reduction <add>, %283, %cst_129 [1] : vector<8x32xf32> to vector<8xf32>
    %285 = vector.shape_cast %284 : vector<8xf32> to vector<8x1xf32>
    %cst_130 = arith.constant 3.200000e+01 : f32
    %286 = vector.broadcast %cst_130 : f32 to vector<8x1xf32>
    %287 = arith.divf %285, %286 : vector<8x1xf32>
    %288 = vector.broadcast %287 : vector<8x1xf32> to vector<8x32xf32>
    %289 = arith.subf %283, %288 : vector<8x32xf32>
    %290 = arith.mulf %289, %289 : vector<8x32xf32>
    %cst_131 = arith.constant dense<0.000000e+00> : vector<8xf32>
    %291 = vector.multi_reduction <add>, %290, %cst_131 [1] : vector<8x32xf32> to vector<8xf32>
    %292 = vector.shape_cast %291 : vector<8xf32> to vector<8x1xf32>
    %cst_132 = arith.constant 0.0322580636 : f32
    %293 = vector.broadcast %cst_132 : f32 to vector<8x1xf32>
    %294 = arith.mulf %292, %293 : vector<8x1xf32>
    %295 = math.sqrt %294 : vector<8x1xf32>
    %cst_133 = arith.constant 1.000000e-03 : f32
    %296 = vector.broadcast %cst_133 : f32 to vector<8x1xf32>
    %297 = arith.addf %295, %296 : vector<8x1xf32>
    %cst_134 = arith.constant 1.000000e+00 : f32
    %298 = vector.broadcast %cst_134 : f32 to vector<8x1xf32>
    %299 = arith.divf %298, %297 : vector<8x1xf32>
    %c0_135 = arith.constant 0 : index
    %c0_136 = arith.constant 0 : index
    %300 = vector.load %arg10[%c0_135, %c0_136] : memref<1x32xf32, #tpu.memory_space<vmem>>, vector<1x32xf32>
    %301 = vector.broadcast %299 : vector<8x1xf32> to vector<8x32xf32>
    %302 = arith.mulf %289, %301 : vector<8x32xf32>
    %303 = vector.broadcast %300 : vector<1x32xf32> to vector<8x32xf32>
    %304 = arith.mulf %303, %302 : vector<8x32xf32>
    %c0_137 = arith.constant 0 : index
    %c0_138 = arith.constant 0 : index
    %305 = vector.load %arg11[%c0_137, %c0_138] : memref<1x32xf32, #tpu.memory_space<vmem>>, vector<1x32xf32>
    %306 = vector.broadcast %305 : vector<1x32xf32> to vector<8x32xf32>
    %307 = arith.addf %304, %306 : vector<8x32xf32>
    %c1_139 = arith.constant 1 : index
    %c0_140 = arith.constant 0 : index
    %c0_141 = arith.constant 0 : index
    %308 = vector.load %arg12[%c1_139, %c0_140, %c0_141] : memref<2x8x32xf32, #tpu.memory_space<vmem>>, vector<1x8x32xf32>
    %309 = vector.shape_cast %308 : vector<1x8x32xf32> to vector<8x32xf32>
    %310 = vector.shape_cast %307 : vector<8x32xf32> to vector<1x8x32xf32>
    tpu.vector_store %arg12[%c1_139, %c0_140, %c0_141], %310 {strides = array<i32>} : memref<2x8x32xf32, #tpu.memory_space<vmem>>, vector<1x8x32xf32>,
    return
  }
  func.func @transform_0(%arg0: i32) -> (i32, i32, i32) {
    %c0_i32 = arith.constant 0 : i32
    %c0_i32_0 = arith.constant 0 : i32
    %c0_i32_1 = arith.constant 0 : i32
    return %arg0, %c0_i32, %c0_i32_0 : i32, i32, i32
  }
  func.func @transform_1(%arg0: i32) -> (i32, i32, i32) {
    %c0_i32 = arith.constant 0 : i32
    %c0_i32_0 = arith.constant 0 : i32
    %c0_i32_1 = arith.constant 0 : i32
    return %arg0, %c0_i32, %c0_i32_0 : i32, i32, i32
  }
  func.func @transform_2(%arg0: i32) -> (i32, i32, i32) {
    %c0_i32 = arith.constant 0 : i32
    %c0_i32_0 = arith.constant 0 : i32
    %c0_i32_1 = arith.constant 0 : i32
    return %arg0, %c0_i32, %c0_i32_0 : i32, i32, i32
  }
  func.func @transform_3(%arg0: i32) -> (i32, i32, i32) {
    %c0_i32 = arith.constant 0 : i32
    %c0_i32_0 = arith.constant 0 : i32
    %c0_i32_1 = arith.constant 0 : i32
    return %arg0, %c0_i32, %c0_i32_0 : i32, i32, i32
  }
  func.func @transform_4(%arg0: i32) -> (i32, i32) {
    %c0_i32 = arith.constant 0 : i32
    %c0_i32_0 = arith.constant 0 : i32
    %c0_i32_1 = arith.constant 0 : i32
    return %c0_i32, %c0_i32_0 : i32, i32
  }
  func.func @transform_5(%arg0: i32) -> (i32, i32) {
    %c0_i32 = arith.constant 0 : i32
    %c0_i32_0 = arith.constant 0 : i32
    %c0_i32_1 = arith.constant 0 : i32
    return %c0_i32, %c0_i32_0 : i32, i32
  }
  func.func @transform_6(%arg0: i32) -> (i32, i32) {
    %c0_i32 = arith.constant 0 : i32
    %c0_i32_0 = arith.constant 0 : i32
    %c0_i32_1 = arith.constant 0 : i32
    return %c0_i32, %c0_i32_0 : i32, i32
  }
  func.func @transform_7(%arg0: i32) -> (i32, i32) {
    %c0_i32 = arith.constant 0 : i32
    %c0_i32_0 = arith.constant 0 : i32
    %c0_i32_1 = arith.constant 0 : i32
    return %c0_i32, %c0_i32_0 : i32, i32
  }
  func.func @transform_8(%arg0: i32) -> (i32, i32) {
    %c0_i32 = arith.constant 0 : i32
    %c0_i32_0 = arith.constant 0 : i32
    %c0_i32_1 = arith.constant 0 : i32
    return %c0_i32, %c0_i32_0 : i32, i32
  }
  func.func @transform_9(%arg0: i32) -> (i32, i32) {
    %c0_i32 = arith.constant 0 : i32
    %c0_i32_0 = arith.constant 0 : i32
    %c0_i32_1 = arith.constant 0 : i32
    return %c0_i32, %c0_i32_0 : i32, i32
  }
  func.func @transform_10(%arg0: i32) -> (i32, i32) {
    %c0_i32 = arith.constant 0 : i32
    %c0_i32_0 = arith.constant 0 : i32
    %c0_i32_1 = arith.constant 0 : i32
    return %c0_i32, %c0_i32_0 : i32, i32
  }
  func.func @transform_11(%arg0: i32) -> (i32, i32, i32) {
    %c0_i32 = arith.constant 0 : i32
    %c0_i32_0 = arith.constant 0 : i32
    %c0_i32_1 = arith.constant 0 : i32
    return %arg0, %c0_i32, %c0_i32_0 : i32, i32, i32
  }
  func.func @transform_12(%arg0: i32) -> (i32, i32, i32, i32) {
    %c0_i32 = arith.constant 0 : i32
    %c0_i32_0 = arith.constant 0 : i32
    %c0_i32_1 = arith.constant 0 : i32
    %c0_i32_2 = arith.constant 0 : i32
    return %c0_i32, %arg0, %c0_i32_0, %c0_i32_1 : i32, i32, i32, i32
  }
}

</mosaic_0001>

<bundles_post_ra>
// kernel: tpu_custom_call.1
= control target key start
LH: loop header
LB: loop body
LE: loop exit
PB: predicated region body
PF: predicated region fallthrough
CT: control target
= control target key end

     0   :  { %18 = vsyncpa [#allocation3], 0  ;;  %vm98_vm0 = vcmask 261120   ;;  %s2726_s0 = inlined_call_operand.vmem [shape: f32[2,8,32], index: 0, kind: input, shape index: {}]   ;;  %s2727_s1 = inlined_call_operand.vmem [shape: f32[2,8,32], index: 1, kind: input, shape index: {}]   ;;  %s2728_s2 = inlined_call_operand.vmem [shape: f32[2,8,32], index: 2, kind: input, shape index: {}]   ;;  %s2729_s3 = inlined_call_operand.vmem [shape: f32[2,8,8], index: 3, kind: input, shape index: {}]   ;;  %s2730_s4 = inlined_call_operand.vmem [shape: bf16[32,512], index: 4, kind: input, shape index: {}]   ;;  %s2731_s5 = inlined_call_operand.vmem [shape: bf16[32,512], index: 5, kind: input, shape index: {}]   ;;  %s2732_s6 = inlined_call_operand.vmem [shape: bf16[32,512], index: 6, kind: input, shape index: {}]   ;;  %s2733_s7 = inlined_call_operand.vmem [shape: bf16[512,32], index: 7, kind: input, shape index: {}]   ;;  %s2734_s8 = inlined_call_operand.vmem [shape: f32[1,32], index: 8, kind: input, shape index: {}]   ;;  %s2735_s9 = inlined_call_operand.vmem [shape: f32[1,32], index: 9, kind: input, shape index: {}]   ;;  %s2736_s10 = inlined_call_operand.vmem [shape: f32[1,32], index: 10, kind: input, shape index: {}]   ;;  %s2737_s11 = inlined_call_operand.hbm [shape: f32[2,8,32], index: 11, kind: output, shape index: {0}]   ;;  %s2738_s12 = inlined_call_operand.hbm [shape: bf16[4,2,8,8], index: 12, kind: output, shape index: {1}]  }
   0x1   :  { %v1584_v0 = vld [vmem:[%s2730_s4 + $0x28] sm:$0xf]  ;;  %v1939_v1 = vld [vmem:[%s2730_s4 + $0x34] sm:$0xf0]  ;;  %v1944_v2 = vld [vmem:[%s2731_s5 + $0x24] sm:$0xf] }
   0x2   :  { %v1585_v3 = vor.u32 %v1939_v1, %v1584_v0  ;;  %v1614_v4 = vld [vmem:[%s2731_s5 + $0x30] sm:$0xf0]  ;;  %v1936_v5 = vld [vmem:[%s2730_s4 + $0x24] sm:$0xf]  ;;  %v1568_v9 = vld [vmem:[%s2730_s4 + $0x8] sm:$0xf] }
   0x3   :  { %v1578_v6 = vld [vmem:[%s2730_s4 + $0x30] sm:$0xf0]  ;;  %v1617_v7 = vor.u32 %v1944_v2, %v1614_v4  ;;  %v1935_v10 = vld [vmem:[%s2730_s4 + $0x14] sm:$0xf0]  ;;  %v1940_v11 = vld [vmem:[%s2731_s5 + $0x4] sm:$0xf] }
   0x4   :  { %v1581_v8 = vor.u32 %v1936_v5, %v1578_v6  ;;  %136 = vmatpush.bf16.msra.mxu2 %v1585_v3  ;;  %v1569_v12 = vor.u32 %v1935_v10, %v1568_v9  ;;  %v1598_v13 = vld [vmem:[%s2731_s5 + $0x10] sm:$0xf0]  ;;  %v1932_v14 = vld [vmem:[%s2730_s4 + $0x4] sm:$0xf]  ;;  %v44_v19 = vld [vmem:[%s2726_s0 + $0x8] sm:$0xff] }
   0x5   :  { %v1562_v15 = vld [vmem:[%s2730_s4 + $0x10] sm:$0xf0]  ;;  %230 = vmatpush.bf16.msra.mxu1 %v1617_v7  ;;  %v1601_v16 = vor.u32 %v1940_v11, %v1598_v13  ;;  %v43_v18 = vld [vmem:[%s2726_s0] sm:$0xff]  ;;  %v46_v21 = vld [vmem:[%s2727_s1 + $0x8] sm:$0xff] }
   0x6   :  { %122 = vmatpush.bf16.msra.mxu3 %v1581_v8  ;;  %v1565_v17 = vor.u32 %v1932_v14, %v1562_v15  ;;  %v45_v20 = vld [vmem:[%s2727_s1] sm:$0xff]  ;;  %v1620_v22 = vld [vmem:[%s2731_s5 + $0x28] sm:$0xf]  ;;  %v1947_v23 = vld [vmem:[%s2731_s5 + $0x34] sm:$0xf0]  ;;  %v2253_v24 = vpack.c.bf16 %v44_v19, %v43_v18 }
   0x7   :  { %v1621_v25 = vor.u32 %v1947_v23, %v1620_v22  ;;  %v1604_v26 = vld [vmem:[%s2731_s5 + $0x8] sm:$0xf]  ;;  %v1943_v27 = vld [vmem:[%s2731_s5 + $0x14] sm:$0xf0]  ;;  %v2261_v28 = vpack.c.bf16 %v46_v21, %v45_v20 }
   0x8   :  { %137 = vmatpush.bf16.msra.mxu2 %v1569_v12  ;;  %v1656_v29 = vld [vmem:[%s2732_s6 + $0x28] sm:$0xf]  ;;  %v1955_v30 = vld [vmem:[%s2732_s6 + $0x34] sm:$0xf0]  ;;  %v1605_v31 = vor.u32 %v1943_v27, %v1604_v26 }
   0x9   :  { %231 = vmatpush.bf16.msra.mxu1 %v1601_v16  ;;  %v1657_v32 = vor.u32 %v1955_v30, %v1656_v29 }
   0xa   :  { %123 = vmatpush.bf16.msra.mxu3 %v1565_v17 }
   0xb   :  { %1592 = vmatmul.msk.bf16.vlgmr.msra.gmra.mxu2 %vm98_vm0, %v2253_v24 }
   0xc   :  { %244 = vmatpush.bf16.msrb.mxu2 %v1621_v25 }
   0xd   :  { %19 = vsyncpa [#allocation5], 0  ;;  %1627 = vmatmul.msk.bf16.vlgmr.msra.gmra.mxu1 %vm98_vm0, %v2261_v28  ;;  %1591 = vmatmul.msk.bf16.vlgmr.msra.gmra.mxu3 %vm98_vm0, %v2253_v24  ;;  %v1640_v33 = vld [vmem:[%s2732_s6 + $0x8] sm:$0xf]  ;;  %v1951_v34 = vld [vmem:[%s2732_s6 + $0x14] sm:$0xf0] }
   0xe   :  { %v1641_v35 = vor.u32 %v1951_v34, %v1640_v33  ;;  %v47_v36 = vld [vmem:[%s2728_s2] sm:$0xff]  ;;  %v48_v37 = vld [vmem:[%s2728_s2 + $0x8] sm:$0xff]  ;;  %v1650_v40 = vld [vmem:[%s2732_s6 + $0x30] sm:$0xf0]  ;;  %vm409_vm1 = vcmask 1043456   ;;  %vm391_vm2 = vcmask 64512  }
   0xf   :  { %v2289_v38 = vpack.c.bf16 %v48_v37, %v47_v36  ;;  %v1952_v39 = vld [vmem:[%s2732_s6 + $0x24] sm:$0xf]  ;;  %v1634_v43 = vld [vmem:[%s2732_s6 + $0x10] sm:$0xf0]  ;;  %v1979_v52 = vld [vmem:[%s2733_s7 + $0xb8] sm:$0xff]  ;;  %vm404_vm3 = vcmask 60416  }
  0x10   :  { %245 = vmatpush.bf16.msrb.mxu2 %v1605_v31  ;;  %v1653_v41 = vor.u32 %v1952_v39, %v1650_v40  ;;  %v1948_v42 = vld [vmem:[%s2732_s6 + $0x4] sm:$0xf]  ;;  %v1937_v54 = vld [vmem:[%s2730_s4 + $0x2c] sm:$0xf]  ;;  %v1586_v55 = vld [vmem:[%s2730_s4 + $0x38] sm:$0xf0] }
  0x11   :  { %v1637_v44 = vor.u32 %v1948_v42, %v1634_v43  ;;  %v1933_v56 = vld [vmem:[%s2730_s4 + $0xc] sm:$0xf]  ;;  %v1589_v57 = vor.u32 %v1937_v54, %v1586_v55  ;;  %v1570_v58 = vld [vmem:[%s2730_s4 + $0x18] sm:$0xf0]  ;;  %v1978_v61 = vld [vmem:[%s2733_s7 + $0xb0] sm:$0xff]  ;;  %s1541_s16 = sshll.u32 %s2738_s12, 4  ;;  %s1542_s16 = int_to_ptr.hbm [resolvable:$true] %s1541_s16 }
  0x12   :  { %338 = vmatpush.bf16.msrb.mxu1 %v1653_v41  ;;  %v1945_v59 = vld [vmem:[%s2731_s5 + $0x2c] sm:$0xf]  ;;  %v1622_v60 = vld [vmem:[%s2731_s5 + $0x38] sm:$0xf0]  ;;  %v1573_v62 = vor.u32 %v1933_v56, %v1570_v58  ;;  %v1976_v8 = vld [vmem:[%s2733_s7 + $0xa0] sm:$0xff]  ;;  %s2129_s17 = smov 64  }
  0x13   :  { %150 = vmatpush.bf16.msrb.mxu3 %v1589_v57  ;;  %v1625_v63 = vor.u32 %v1945_v59, %v1622_v60  ;;  %v1941_v0 = vld [vmem:[%s2731_s5 + $0xc] sm:$0xf]  ;;  %v1606_v1 = vld [vmem:[%s2731_s5 + $0x18] sm:$0xf0]  ;;  %v1974_v10 = vld [vmem:[%s2733_s7 + $0x90] sm:$0xff]  ;;  %s2130_s18 = smov 4  }
  0x14   :  { %352 = vmatpush.bf16.msra.mxu2 %v1657_v32  ;;  %v1953_v2 = vld [vmem:[%s2732_s6 + $0x2c] sm:$0xf]  ;;  %v1658_v3 = vld [vmem:[%s2732_s6 + $0x38] sm:$0xf0]  ;;  %v1609_v6 = vor.u32 %v1941_v0, %v1606_v1  ;;  %v1972_v13 = vld [vmem:[%s2733_s7 + $0x80] sm:$0xff]  ;;  %s2131_s21 = smov [#allocation2]  }
  0x15   :  { %v1977_v5 = vld [vmem:[%s2733_s7 + $0xa8] sm:$0xff]  ;;  %v1661_v7 = vor.u32 %v1953_v2, %v1658_v3  ;;  %v1975_v9 = vld [vmem:[%s2733_s7 + $0x98] sm:$0xff]  ;;  %v2384_v27 = vld [vmem:[%s2729_s3] sm:$0xff]  ;;  %s1526_s22 = sshll.u32 %s2131_s21, 4  ;;  %s1528_s2 = sshll.u32 %s2737_s11, 4  ;;  %s1527_s22 = int_to_ptr.vmem [resolvable:$true] %s1526_s22  ;;  %s1529_s2 = int_to_ptr.hbm [resolvable:$true] %s1528_s2 }
  0x16   :  { %339 = vmatpush.bf16.msrb.mxu1 %v1637_v44  ;;  %v1973_v11 = vld [vmem:[%s2733_s7 + $0x88] sm:$0xff]  ;;  %v1642_v16 = vld [vmem:[%s2732_s6 + $0x18] sm:$0xf0]  ;;  %v1576_v37 = vld [vmem:[%s2730_s4 + $0x20] sm:$0xf] }
  0x17   :  { %151 = vmatpush.bf16.msrb.mxu3 %v1573_v62  ;;  %v1949_v15 = vld [vmem:[%s2732_s6 + $0xc] sm:$0xf]  ;;  %v1938_v39 = vld [vmem:[%s2730_s4 + $0x2c] sm:$0xf0]  ;;  %v1560_v40 = vld [vmem:[%s2730_s4] sm:$0xf] }
  0x18   :  { %353 = vmatpush.bf16.msra.mxu2 %v1641_v35  ;;  %v1645_v17 = vor.u32 %v1949_v15, %v1642_v16  ;;  %v1577_v41 = vor.u32 %v1938_v39, %v1576_v37  ;;  %v1934_v42 = vld [vmem:[%s2730_s4 + $0xc] sm:$0xf0]  ;;  %v1612_v44 = vld [vmem:[%s2731_s5 + $0x20] sm:$0xf]  ;;  %v1965_v39 = vld [vmem:[%s2733_s7 + $0x48] sm:$0xff] }
  0x19   :  { %v1561_v43 = vor.u32 %v1934_v42, %v1560_v40  ;;  %v1632_v15 = vld [vmem:[%s2732_s6] sm:$0xf] }
  0x1a   :  { %108 = vmatpush.bf16.msra.mxu0 %v1577_v41 }
  0x1b   :  { %1628 = vmatmul.msk.bf16.vlgmr.msrb.gmra.mxu2 %vm98_vm0, %v2261_v28  ;;  %258 = vmatpush.bf16.msra.mxu3 %v1625_v63 }
  0x1d   :  { %1663 = vmatmul.msk.bf16.vlgmr.msrb.gmra.mxu1 %vm98_vm0, %v2289_v38  ;;  %1593 = vmatmul.msk.bf16.vlgmr.msrb.gmra.mxu3 %vm98_vm0, %v2253_v24 }
  0x1e   :  { %109 = vmatpush.bf16.msra.mxu0 %v1561_v43  ;;  %v1964_v43 = vld [vmem:[%s2733_s7 + $0x40] sm:$0xff] }
  0x1f   :  { %259 = vmatpush.bf16.msra.mxu3 %v1609_v6 }
  0x21   :  { %1590 = vmatmul.msk.bf16.vlgmr.msra.gmra.mxu0 %vm98_vm0, %v2253_v24  ;;  %v1942_v24 = vld [vmem:[%s2731_s5 + $0xc] sm:$0xf0] }
  0x23   :  { %366 = vmatpush.bf16.msrb.mxu3 %v1661_v7 }
  0x27   :  { %367 = vmatpush.bf16.msrb.mxu3 %v1645_v17  ;;  %v1950_v17 = vld [vmem:[%s2732_s6 + $0xc] sm:$0xf0] }
  0x2b   :  { %1664 = vmatmul.msk.bf16.vlgmr.msra.gmra.mxu2 %vm98_vm0, %v2289_v38 }
  0x2d   :  { %1629 = vmatmul.msk.bf16.vlgmr.msra.gmra.mxu3 %vm98_vm0, %v2261_v28 }
  0x3d   :  { %1665 = vmatmul.msk.bf16.vlgmr.msrb.gmra.mxu3 %vm98_vm0, %v2289_v38 }
  0x8a   :  { %v233_v45 = vpop.f32.mrf.mxu1 }
  0x8b   :  { %v444_v46 = vpack.c.bf16 %v233_v45, %v233_v45  ;;  %v1946_v45 = vld [vmem:[%s2731_s5 + $0x2c] sm:$0xf0] }
  0x8d   :  { %453 = vmatpush.bf16.xpose.msrb.mxu2 %v444_v46  ;;  %v1613_v46 = vor.u32 %v1946_v45, %v1612_v44 }
  0x8e   :  { %v139_v47 = vpop.f32.mrf.mxu2 }
  0x8f   :  { %v631_v4 = vpack.c.bf16 %v139_v47, %v139_v47  ;;  %216 = vmatpush.bf16.msrb.mxu0 %v1613_v46 }
  0x90   :  { %v125_v48 = vpop.f32.mrf.mxu3 }
  0x91   :  { %v443_v49 = vpack.c.bf16 %v125_v48, %v125_v48 }
  0x92   :  { %v235_v12 = vpop.f32.mrf.mxu1 }
  0x93   :  { %v1020_v14 = vpack.c.bf16 %v235_v12, %v235_v12 }
  0x94   :  { %454 = vmatmul.bf16.vlgmr.msrb.gmra.mxu2 %v443_v49  ;;  %v1596_v49 = vld [vmem:[%s2731_s5] sm:$0xf] }
  0x96   :  { %v2307_v50 = vpop.f32.mrf.mxu2 }
  0x98   :  { %v2420_v60 = vpop.f32.mrf.mxu3 }
  0x9a   :  { %v341_v21 = vpop.f32.mrf.mxu1 }
  0x9b   :  { %v445_v22 = vpack.c.bf16 %v341_v21, %v341_v21  ;;  %v1971_v21 = vld [vmem:[%s2733_s7 + $0x78] sm:$0xff] }
  0x9d   :  { %v477_v25 = vsel %vm409_vm1, %v445_v22, 0 }
  0x9e   :  { %v247_v51 = vpop.f32.mrf.mxu2  ;;  %486 = vmatpush.bf16.msra.mxu3 %v477_v25  ;;  %v111_v62 = vpop.f32.mrf.mxu0 }
  0x9f   :  { %v632_v53 = vpack.c.bf16 %v247_v51, %v247_v51 }
  0xa1   :  { %641 = vmatpush.bf16.xpose.msra.mxu2 %v632_v53 }
  0xa2   :  { %v343_v22 = vpop.f32.mrf.mxu1 }
  0xa6   :  { %v2375_v18 = vpop.f32.mrf.mxu2  ;;  %v113_v1 = vpop.f32.mrf.mxu0 }
  0xa8   :  { %642 = vmatmul.bf16.vlgmr.msra.gmra.mxu2 %v631_v4 }
  0xa9   :  { %745 = vmatpush.bf16.msrb.mxu2 %v1979_v52  ;;  %v1597_v52 = vor.u32 %v1942_v24, %v1596_v49  ;;  %v1208_v24 = vpack.c.bf16 %v2375_v18, %v2375_v18 }
  0xab   :  { %217 = vmatpush.bf16.msrb.mxu0 %v1597_v52 }
  0xad   :  { %746 = vmatpush.bf16.msrb.mxu2 %v1978_v61  ;;  %v153_v61 = vpop.f32.mrf.mxu3 }
  0xae   :  { %v355_v19 = vpop.f32.mrf.mxu2  ;;  %1626 = vmatmul.msk.bf16.vlgmr.msrb.gmra.mxu0 %vm98_vm0, %v2261_v28  ;;  %v759_v25 = vpack.c.bf16 %v153_v61, %v153_v61 }
  0xaf   :  { %v633_v20 = vpack.c.bf16 %v355_v19, %v355_v19  ;;  %v1633_v19 = vor.u32 %v1950_v17, %v1632_v15 }
  0xb1   :  { %747 = vmatpush.bf16.msrb.mxu2 %v1977_v5  ;;  %v665_v23 = vsel %vm409_vm1, %v633_v20, 0 }
  0xb2   :  { %674 = vmatpush.bf16.msrb.mxu3 %v665_v23  ;;  %v1021_v23 = vpack.c.bf16 %v343_v22, %v343_v22 }
  0xb5   :  { %748 = vmatpush.bf16.msrb.mxu2 %v1976_v8  ;;  %v2422_v63 = vpop.f32.mrf.mxu3 }
  0xb6   :  { %v2379_v26 = vpop.f32.mrf.mxu2 }
  0xb9   :  { %749 = vmatpush.bf16.msrb.mxu2 %v1975_v9 }
  0xbd   :  { %750 = vmatpush.bf16.msrb.mxu2 %v1974_v10  ;;  %v261_v2 = vpop.f32.mrf.mxu3 }
  0xbe   :  { %v760_v4 = vpack.c.bf16 %v261_v2, %v261_v2 }
  0xc1   :  { %751 = vmatpush.bf16.msrb.mxu2 %v1973_v11 }
  0xc5   :  { %752 = vmatpush.bf16.msrb.mxu2 %v1972_v13  ;;  %v1648_v13 = vld [vmem:[%s2732_s6 + $0x20] sm:$0xf]  ;;  %v2467_v40 = vpop.f32.mrf.mxu3 }
  0xc9   :  { %1029 = vmatpush.bf16.xpose.msra.mxu2 %v1020_v14  ;;  %v1954_v14 = vld [vmem:[%s2732_s6 + $0x2c] sm:$0xf0] }
  0xca   :  { %v1649_v16 = vor.u32 %v1954_v14, %v1648_v13 }
  0xcc   :  { %324 = vmatpush.bf16.msra.mxu0 %v1649_v16 }
  0xcd   :  { %v369_v41 = vpop.f32.mrf.mxu3 }
  0xd0   :  { %325 = vmatpush.bf16.msra.mxu0 %v1633_v19 }
  0xd3   :  { %1662 = vmatmul.msk.bf16.vlgmr.msra.gmra.mxu0 %vm98_vm0, %v2289_v38  ;;  %v1968_v38 = vld [vmem:[%s2733_s7 + $0x60] sm:$0xff] }
  0xd5   :  { %v2473_v44 = vpop.f32.mrf.mxu3 }
 0x117   :  { %v455_v29 = vpop.f32.mrf.mxu2 }
 0x118   :  { %v456_v30 = vadd.f32 %v455_v29, %v2384_v27  ;;  %v1970_v29 = vld [vmem:[%s2733_s7 + $0x70] sm:$0xff] }
 0x11a   :  { %v459_v31 = vsel %vm391_vm2, %v456_v30, -inf }
 0x11b   :  { %460 = vmax.xlane.f32.xlu0 %v459_v31  ;;  %v1969_v31 = vld [vmem:[%s2733_s7 + $0x68] sm:$0xff] }
 0x11f   :  { %v457_v32 = vpop.f32.mrf.mxu2 }
 0x120   :  { %v375_v32 = vpack.c.bf16 %v111_v62, %v111_v62 }
 0x12b   :  { %v643_v33 = vpop.f32.mrf.mxu2  ;;  %v219_v6 = vpop.f32.mrf.mxu0 }
 0x12c   :  { %v644_v34 = vadd.f32 %v643_v33, %v2384_v27  ;;  %v376_v20 = vpack.c.bf16 %v219_v6, %v219_v6  ;;  %v1967_v33 = vld [vmem:[%s2733_s7 + $0x58] sm:$0xff] }
 0x12e   :  { %v647_v35 = vsel %vm391_vm2, %v644_v34, -inf  ;;  %385 = vmatpush.bf16.xpose.msrb.mxu0 %v376_v20 }
 0x12f   :  { %648 = vmax.xlane.f32.xlu0 %v647_v35  ;;  %v953_v35 = vpack.c.bf16 %v113_v1, %v113_v1 }
 0x133   :  { %v645_v36 = vpop.f32.mrf.mxu2  ;;  %v221_v8 = vpop.f32.mrf.mxu0 }
 0x134   :  { %v954_v11 = vpack.c.bf16 %v221_v8, %v221_v8  ;;  %v1966_v36 = vld [vmem:[%s2733_s7 + $0x50] sm:$0xff] }
 0x135   :  { %386 = vmatmul.bf16.vlgmr.msrb.gmra.mxu0 %v375_v32 }
 0x136   :  { %557 = vmatpush.bf16.msra.mxu0 %v1971_v21 }
 0x13a   :  { %558 = vmatpush.bf16.msra.mxu0 %v1970_v29 }
 0x13e   :  { %559 = vmatpush.bf16.msra.mxu0 %v1969_v31 }
 0x142   :  { %560 = vmatpush.bf16.msra.mxu0 %v1968_v38 }
 0x146   :  { %561 = vmatpush.bf16.msra.mxu0 %v1967_v33 }
 0x14a   :  { %562 = vmatpush.bf16.msra.mxu0 %v1966_v36 }
 0x14e   :  { %563 = vmatpush.bf16.msra.mxu0 %v1965_v39 }
 0x152   :  { %564 = vmatpush.bf16.msra.mxu0 %v1964_v43 }
 0x18e   :  { %v461_v47 = vpop.xlane.xlu0 %460 }
 0x18f   :  { %v462_v48 = vsub.f32 %v456_v30, %v461_v47  ;;  %v1053_v30 = vsel %vm409_vm1, %v1021_v23, 0 }
 0x191   :  { %v463_v51 = vmul.f32 1.442695, %v462_v48 }
 0x193   :  { %2033 = vpow2.f32 %v463_v51  ;;  %v327_v51 = vpop.f32.mrf.mxu0 }
 0x194   :  { %v377_v52 = vpack.c.bf16 %v327_v51, %v327_v51 }
 0x199   :  { %v2034_v53 = vpop.eup %2033 }
 0x19a   :  { %v465_v54 = vsel %vm391_vm2, %v2034_v53, 0.0 }
 0x19b   :  { %466 = vadd.xlane.f32.xlu1 %v465_v54  ;;  %v411_v54 = vsel %vm409_vm1, %v377_v52, 0 }
 0x19c   :  { %420 = vmatpush.bf16.msra.mxu1 %v411_v54 }
 0x1a2   :  { %v649_v55 = vpop.xlane.xlu0 %648 }
 0x1a3   :  { %v650_v56 = vsub.f32 %v644_v34, %v649_v55  ;;  %v1209_v34 = vpack.c.bf16 %v2379_v26, %v2379_v26  ;;  %v761_v26 = vpack.c.bf16 %v369_v41, %v369_v41  ;;  %v329_v55 = vpop.f32.mrf.mxu0 }
 0x1a5   :  { %v651_v57 = vmul.f32 1.442695, %v650_v56  ;;  %v1241_v37 = vsel %vm409_vm1, %v1209_v34, 0  ;;  %v793_v42 = vsel %vm409_vm1, %v761_v26, 0  ;;  %v955_v56 = vpack.c.bf16 %v329_v55, %v329_v55 }
 0x1a6   :  { %802 = vmatpush.bf16.msrb.mxu0 %v793_v42 }
 0x1a7   :  { %2035 = vpow2.f32 %v651_v57 }
 0x1ad   :  { %v2036_v58 = vpop.eup %2035 }
 0x1ae   :  { %v653_v59 = vsel %vm391_vm2, %v2036_v58, 0.0 }
 0x1af   :  { %654 = vadd.xlane.f32.xlu1 %v653_v59  ;;  %v1019_v59 = vpack.c.bf16 %v2420_v60, %v2420_v60 }
 0x1b2   :  { %v387_v61 = vpop.f32.mrf.mxu0 }
 0x1ba   :  { %v389_v62 = vpop.f32.mrf.mxu0 }
 0x1bb   :  { %v1961_v62 = vld [vmem:[%s2733_s7 + $0x28] sm:$0xff] }
 0x20e   :  { %v467_v0 = vpop.xlane.xlu1 %466 }
 0x20f   :  { %2037 = vrcp.f32 %v467_v0  ;;  %v1207_v0 = vpack.c.bf16 %v2307_v50, %v2307_v50 }
 0x215   :  { %v2038_v28 = vpop.eup %2037 }
 0x216   :  { %v469_v3 = vmul.f32 %v2038_v28, %v2034_v53 }
 0x218   :  { %v470_v5 = vpack.c.bf16 %v469_v3, %v469_v3 }
 0x21a   :  { %472 = vst.msk [vmem:[#allocation4 + $0x8] sm:$0xf] %vm404_vm3, %v470_v5  ;;  %1667 = vmatmul.msk.bf16.vlgmr.msra.gmra.mxu3 %vm391_vm2, %v470_v5 }
 0x21b   :  { %769 = vmatpush.bf16.xpose.msra.mxu3 %v760_v4  ;;  %v2490_v4 = vld [vmem:[%s2729_s3 + $0x8] sm:$0xff]  ;;  %s2132_s3 = smov 128  }
 0x222   :  { %v655_v7 = vpop.xlane.xlu1 %654 }
 0x223   :  { %2039 = vrcp.f32 %v655_v7 }
 0x229   :  { %v2040_v9 = vpop.eup %2039 }
 0x22a   :  { %v657_v10 = vmul.f32 %v2040_v9, %v2036_v58  ;;  %v987_v58 = vsel %vm409_vm1, %v955_v56, 0 }
 0x22c   :  { %v658_v12 = vpack.c.bf16 %v657_v10, %v657_v10  ;;  %v388_v10 = vadd.f32 %v387_v61, %v2384_v27  ;;  %v1962_v61 = vld [vmem:[%s2733_s7 + $0x30] sm:$0xff] }
 0x22e   :  { %660 = vst.msk [vmem:[#allocation4 + $0x10] sm:$0xf] %vm404_vm3, %v658_v12  ;;  %1732 = vmatmul.msk.bf16.vlgmr.msrb.gmra.mxu3 %vm391_vm2, %v658_v12  ;;  %v392_v12 = vsel %vm391_vm2, %v388_v10, -inf }
 0x22f   :  { %963 = vmatpush.bf16.xpose.msrb.mxu3 %v954_v11 }
 0x23e   :  { %770 = vmatmul.bf16.vlgmr.msra.gmra.mxu3 %v759_v25 }
 0x23f   :  { %1062 = vmatpush.bf16.msra.mxu3 %v1053_v30 }
 0x24e   :  { %964 = vmatmul.bf16.vlgmr.msrb.gmra.mxu3 %v953_v35 }
 0x24f   :  { %1250 = vmatpush.bf16.msrb.mxu3 %v1241_v37 }
 0x29d   :  { %v488_v45 = vpop.f32.mrf.mxu3 }
 0x29e   :  { %v492_v46 = vpack.c.bf16 %v488_v45, %v488_v45  ;;  %v1336_v45 = vpack.c.bf16 %v2467_v40, %v2467_v40  ;;  %v2010_v40 = vld [vmem:[%s2733_s7 + $0xb0] sm:$0xff] }
 0x2a0   :  { %565 = vmatmul.bf16.vlgmr.msra.gmra.mxu0 %v492_v46 }
 0x2a1   :  { %996 = vmatpush.bf16.msra.mxu0 %v987_v58 }
 0x2a5   :  { %v490_v47 = vpop.f32.mrf.mxu3 }
 0x2a6   :  { %v2011_v47 = vld [vmem:[%s2733_s7 + $0xb8] sm:$0xff] }
 0x2b1   :  { %v676_v48 = vpop.f32.mrf.mxu3 }
 0x2b2   :  { %v680_v49 = vpack.c.bf16 %v676_v48, %v676_v48  ;;  %v1963_v48 = vld [vmem:[%s2733_s7 + $0x38] sm:$0xff] }
 0x2b3   :  { %618 = vmatpush.bf16.msrb.mxu1 %v1963_v48 }
 0x2b4   :  { %753 = vmatmul.bf16.vlgmr.msrb.gmra.mxu2 %v680_v49 }
 0x2b5   :  { %1217 = vmatpush.bf16.xpose.msrb.mxu2 %v1208_v24 }
 0x2b7   :  { %619 = vmatpush.bf16.msrb.mxu1 %v1962_v61 }
 0x2b9   :  { %v678_v53 = vpop.f32.mrf.mxu3 }
 0x2bb   :  { %620 = vmatpush.bf16.msrb.mxu1 %v1961_v62 }
 0x2c1   :  { %v771_v57 = vpop.f32.mrf.mxu3 }
 0x2c2   :  { %v772_v21 = vadd.f32 %v771_v57, %v2384_v27 }
 0x2c4   :  { %1030 = vmatmul.bf16.vlgmr.msra.gmra.mxu2 %v1019_v59  ;;  %v775_v29 = vsel %vm391_vm2, %v772_v21, -inf  ;;  %v1335_v59 = vpack.c.bf16 %v2422_v63, %v2422_v63  ;;  %v2008_v63 = vld [vmem:[%s2733_s7 + $0xa0] sm:$0xff] }
 0x2c5   :  { %1321 = vmatpush.bf16.msra.mxu2 %v2011_v47  ;;  %v1998_v47 = vld [vmem:[%s2733_s7 + $0x50] sm:$0xff] }
 0x2c9   :  { %v773_v18 = vpop.f32.mrf.mxu3  ;;  %1322 = vmatpush.bf16.msra.mxu2 %v2010_v40 }
 0x2ca   :  { %v2009_v18 = vld [vmem:[%s2733_s7 + $0xa8] sm:$0xff] }
 0x2cd   :  { %1323 = vmatpush.bf16.msra.mxu2 %v2009_v18 }
 0x2d1   :  { %v965_v16 = vpop.f32.mrf.mxu3  ;;  %1324 = vmatpush.bf16.msra.mxu2 %v2008_v63  ;;  %v1337_v63 = vpack.c.bf16 %v2473_v44, %v2473_v44  ;;  %v1994_v44 = vld [vmem:[%s2733_s7 + $0x30] sm:$0xff] }
 0x2d2   :  { %v2503_v34 = vadd.f32 %v2490_v4, %v965_v16  ;;  %v1987_v16 = vld [vmem:[%s2733_s7 + $0xf8] sm:$0xff] }
 0x2d4   :  { %1218 = vmatmul.bf16.vlgmr.msrb.gmra.mxu2 %v1207_v0  ;;  %v969_v27 = vsel %vm391_vm2, %v2503_v34, -inf  ;;  %v1960_v0 = vld [vmem:[%s2733_s7 + $0x20] sm:$0xff] }
 0x2d5   :  { %621 = vmatpush.bf16.msrb.mxu1 %v1960_v0 }
 0x2d9   :  { %v967_v20 = vpop.f32.mrf.mxu3 }
 0x31d   :  { %v2483_v28 = vpop.f32.mrf.mxu0 }
 0x325   :  { %v568_v1 = vpop.f32.mrf.mxu0 }
 0x326   :  { %v2007_v1 = vld [vmem:[%s2733_s7 + $0x98] sm:$0xff] }
 0x327   :  { %1325 = vmatpush.bf16.msra.mxu2 %v2007_v1 }
 0x337   :  { %v2485_v2 = vpop.f32.mrf.mxu2 }
 0x33f   :  { %v756_v3 = vpop.f32.mrf.mxu2 }
 0x340   :  { %v1959_v3 = vld [vmem:[%s2733_s7 + $0x18] sm:$0xff] }
 0x341   :  { %622 = vmatpush.bf16.msrb.mxu1 %v1959_v3  ;;  %v1369_v3 = vsel %vm409_vm1, %v1337_v63, 0 }
 0x347   :  { %v1031_v60 = vpop.f32.mrf.mxu2 }
 0x348   :  { %v1032_v5 = vadd.f32 %v2490_v4, %v1031_v60  ;;  %v2006_v60 = vld [vmem:[%s2733_s7 + $0x90] sm:$0xff] }
 0x349   :  { %1326 = vmatpush.bf16.msra.mxu2 %v2006_v60 }
 0x34a   :  { %v1035_v6 = vsel %vm391_vm2, %v1032_v5, -inf }
 0x34b   :  { %1036 = vmax.xlane.f32.xlu2 %v1035_v6  ;;  %v2005_v6 = vld [vmem:[%s2733_s7 + $0x88] sm:$0xff] }
 0x34d   :  { %1327 = vmatpush.bf16.msra.mxu2 %v2005_v6  ;;  %v1993_v6 = vld [vmem:[%s2733_s7 + $0x28] sm:$0xff] }
 0x34f   :  { %v1033_v7 = vpop.f32.mrf.mxu2 }
 0x350   :  { %v1957_v7 = vld [vmem:[%s2733_s7 + $0x8] sm:$0xff] }
 0x357   :  { %v1219_v50 = vpop.f32.mrf.mxu2 }
 0x358   :  { %v1220_v8 = vadd.f32 %v2490_v4, %v1219_v50  ;;  %v2004_v50 = vld [vmem:[%s2733_s7 + $0x80] sm:$0xff] }
 0x359   :  { %1328 = vmatpush.bf16.msra.mxu2 %v2004_v50  ;;  %v1991_v50 = vld [vmem:[%s2733_s7 + $0x18] sm:$0xff] }
 0x35a   :  { %v1223_v9 = vsel %vm391_vm2, %v1220_v8, -inf }
 0x35b   :  { %1224 = vmax.xlane.f32.xlu2 %v1223_v9  ;;  %v1956_v9 = vld [vmem:[%s2733_s7] sm:$0xff] }
 0x35f   :  { %v1221_v11 = vpop.f32.mrf.mxu2 }
 0x363   :  { %393 = vmax.xlane.f32.xlu2 %v392_v12 }
 0x3be   :  { %v1037_v13 = vpop.xlane.xlu2 %1036 }
 0x3bf   :  { %v1038_v14 = vsub.f32 %v1032_v5, %v1037_v13  ;;  %v1958_v5 = vld [vmem:[%s2733_s7 + $0x10] sm:$0xff] }
 0x3c0   :  { %623 = vmatpush.bf16.msrb.mxu1 %v1958_v5  ;;  %v1995_v5 = vld [vmem:[%s2733_s7 + $0x38] sm:$0xff] }
 0x3c1   :  { %v1039_v15 = vmul.f32 1.442695, %v1038_v14 }
 0x3c3   :  { %2041 = vpow2.f32 %v1039_v15 }
 0x3c4   :  { %624 = vmatpush.bf16.msrb.mxu1 %v1957_v7  ;;  %v1992_v7 = vld [vmem:[%s2733_s7 + $0x20] sm:$0xff] }
 0x3c8   :  { %625 = vmatpush.bf16.msrb.mxu1 %v1956_v9  ;;  %v1990_v9 = vld [vmem:[%s2733_s7 + $0x10] sm:$0xff] }
 0x3c9   :  { %v2042_v17 = vpop.eup %2041 }
 0x3ca   :  { %v1041_v19 = vsel %vm391_vm2, %v2042_v17, 0.0 }
 0x3cb   :  { %1042 = vadd.xlane.f32.xlu0 %v1041_v19 }
 0x3ce   :  { %v1225_v22 = vpop.xlane.xlu2 %1224 }
 0x3cf   :  { %v1226_v23 = vsub.f32 %v1220_v8, %v1225_v22  ;;  %v1985_v22 = vld [vmem:[%s2733_s7 + $0xe8] sm:$0xff] }
 0x3d1   :  { %v1227_v25 = vmul.f32 1.442695, %v1226_v23 }
 0x3d3   :  { %2043 = vpow2.f32 %v1227_v25  ;;  %776 = vmax.xlane.f32.xlu0 %v775_v29  ;;  %v1984_v25 = vld [vmem:[%s2733_s7 + $0xe0] sm:$0xff] }
 0x3d6   :  { %v394_v30 = vpop.xlane.xlu2 %393 }
 0x3d7   :  { %v395_v31 = vsub.f32 %v388_v10, %v394_v30 }
 0x3d9   :  { %v2044_v38 = vpop.eup %2043  ;;  %v396_v32 = vmul.f32 1.442695, %v395_v31 }
 0x3da   :  { %v1229_v33 = vsel %vm391_vm2, %v2044_v38, 0.0 }
 0x3db   :  { %2045 = vpow2.f32 %v396_v32  ;;  %1230 = vadd.xlane.f32.xlu1 %v1229_v33  ;;  %v1982_v33 = vld [vmem:[%s2733_s7 + $0xd0] sm:$0xff] }
 0x3e1   :  { %v2046_v35 = vpop.eup %2045 }
 0x3e2   :  { %v398_v36 = vsel %vm391_vm2, %v2046_v35, 0.0 }
 0x3e3   :  { %399 = vadd.xlane.f32.xlu0 %v398_v36  ;;  %970 = vmax.xlane.f32.xlu1 %v969_v27 }
 0x43e   :  { %v1043_v37 = vpop.xlane.xlu0 %1042 }
 0x43f   :  { %2047 = vrcp.f32 %v1043_v37 }
 0x445   :  { %v2048_v39 = vpop.eup %2047 }
 0x446   :  { %v1045_v41 = vmul.f32 %v2048_v39, %v2042_v17  ;;  %v777_v26 = vpop.xlane.xlu0 %776  ;;  %v1986_v17 = vld [vmem:[%s2733_s7 + $0xf0] sm:$0xff] }
 0x447   :  { %v778_v42 = vsub.f32 %v772_v21, %v777_v26  ;;  %v1980_v26 = vld [vmem:[%s2733_s7 + $0xc0] sm:$0xff] }
 0x448   :  { %v1046_v43 = vpack.c.bf16 %v1045_v41, %v1045_v41 }
 0x449   :  { %v779_v46 = vmul.f32 1.442695, %v778_v42  ;;  %v2002_v42 = vld [vmem:[%s2733_s7 + $0x70] sm:$0xff] }
 0x44a   :  { %1048 = vst.msk [vmem:[#allocation4 + $0xc] sm:$0xf] %vm404_vm3, %v1046_v43  ;;  %1800 = vmatmul.msk.bf16.vlgmr.msra.gmra.mxu3 %vm391_vm2, %v1046_v43  ;;  %v2001_v43 = vld [vmem:[%s2733_s7 + $0x68] sm:$0xff] }
 0x44b   :  { %2049 = vpow2.f32 %v779_v46  ;;  %1345 = vmatpush.bf16.xpose.msra.mxu3 %v1336_v45  ;;  %v2000_v45 = vld [vmem:[%s2733_s7 + $0x60] sm:$0xff]  ;;  %v1999_v46 = vld [vmem:[%s2733_s7 + $0x58] sm:$0xff] }
 0x44e   :  { %v1231_v49 = vpop.xlane.xlu1 %1230 }
 0x44f   :  { %2051 = vrcp.f32 %v1231_v49  ;;  %v1997_v49 = vld [vmem:[%s2733_s7 + $0x48] sm:$0xff] }
 0x451   :  { %v2050_v24 = vpop.eup %2049 }
 0x452   :  { %v781_v51 = vsel %vm391_vm2, %v2050_v24, 0.0 }
 0x453   :  { %782 = vadd.xlane.f32.xlu1 %v781_v51 }
 0x455   :  { %v2052_v52 = vpop.eup %2051 }
 0x456   :  { %v1233_v53 = vmul.f32 %v2052_v52, %v2044_v38  ;;  %v400_v54 = vpop.xlane.xlu0 %399  ;;  %v971_v8 = vpop.xlane.xlu1 %970  ;;  %v1983_v38 = vld [vmem:[%s2733_s7 + $0xd8] sm:$0xff] }
 0x457   :  { %2053 = vrcp.f32 %v400_v54  ;;  %v972_v30 = vsub.f32 %v2503_v34, %v971_v8  ;;  %v1981_v34 = vld [vmem:[%s2733_s7 + $0xc8] sm:$0xff] }
 0x458   :  { %v1234_v55 = vpack.c.bf16 %v1233_v53, %v1233_v53 }
 0x459   :  { %v973_v32 = vmul.f32 1.442695, %v972_v30 }
 0x45a   :  { %1236 = vst.msk [vmem:[#allocation4 + $0x14] sm:$0xf] %vm404_vm3, %v1234_v55  ;;  %1865 = vmatmul.msk.bf16.vlgmr.msrb.gmra.mxu3 %vm391_vm2, %v1234_v55 }
 0x45d   :  { %v2054_v56 = vpop.eup %2053 }
 0x45e   :  { %v402_v57 = vmul.f32 %v2054_v56, %v2046_v35 }
 0x460   :  { %v403_v58 = vpack.c.bf16 %v402_v57, %v402_v57 }
 0x462   :  { %405 = vst.msk [vmem:[#allocation4] sm:$0xf] %vm404_vm3, %v403_v58  ;;  %1666 = vmatmul.msk.bf16.vlgmr.msra.gmra.mxu1 %vm391_vm2, %v403_v58 }
 0x463   :  { %873 = vmatpush.bf16.msra.mxu1 %v1987_v16 }
 0x467   :  { %874 = vmatpush.bf16.msra.mxu1 %v1986_v17 }
 0x46a   :  { %1346 = vmatmul.bf16.vlgmr.msra.gmra.mxu3 %v1335_v59 }
 0x46b   :  { %875 = vmatpush.bf16.msra.mxu1 %v1985_v22 }
 0x46f   :  { %876 = vmatpush.bf16.msra.mxu1 %v1984_v25 }
 0x473   :  { %877 = vmatpush.bf16.msra.mxu1 %v1983_v38 }
 0x477   :  { %878 = vmatpush.bf16.msra.mxu1 %v1982_v33  ;;  %v2127_v33 = vmov 32.0  }
 0x47b   :  { %879 = vmatpush.bf16.msra.mxu1 %v1981_v34 }
 0x47f   :  { %880 = vmatpush.bf16.msra.mxu1 %v1980_v26 }
 0x4c6   :  { %v783_v10 = vpop.xlane.xlu1 %782 }
 0x4c7   :  { %2055 = vrcp.f32 %v783_v10 }
 0x4c8   :  { %2057 = vpow2.f32 %v973_v32  ;;  %v2019_v32 = vld [vmem:[%s2733_s7 + $0xf8] sm:$0xff] }
 0x4cd   :  { %v2056_v11 = vpop.eup %2055  ;;  %v2567_v12 = vpop.f32.mrf.mxu3 }
 0x4ce   :  { %v785_v13 = vmul.f32 %v2056_v11, %v2050_v24  ;;  %v2058_v37 = vpop.eup %2057  ;;  %v1996_v24 = vld [vmem:[%s2733_s7 + $0x40] sm:$0xff]  ;;  %v1068_v60 = vpack.c.bf16 %v2567_v12, %v2567_v12 }
 0x4cf   :  { %v975_v41 = vsel %vm391_vm2, %v2058_v37, 0.0  ;;  %v887_v12 = vld [vmem:[%s2726_s0] sm:$0xff] }
 0x4d0   :  { %v786_v14 = vpack.c.bf16 %v785_v13, %v785_v13 }
 0x4d2   :  { %788 = vst.msk [vmem:[#allocation4 + $0x18] sm:$0xf] %vm404_vm3, %v786_v14  ;;  %1765 = vmatmul.msk.bf16.vlgmr.msrb.gmra.mxu0 %vm391_vm2, %v786_v14  ;;  %v2027_v14 = vld [vmem:[%s2734_s8] ss:$0 sm:$0xff] }
 0x4d5   :  { %v1066_v15 = vpop.f32.mrf.mxu3 }
 0x4dd   :  { %v1252_v19 = vpop.f32.mrf.mxu3 }
 0x4de   :  { %v1256_v20 = vpack.c.bf16 %v1252_v19, %v1252_v19 }
 0x4df   :  { %v422_v21 = vpop.f32.mrf.mxu1 }
 0x4e0   :  { %v426_v23 = vpack.c.bf16 %v422_v21, %v422_v21  ;;  %1329 = vmatmul.bf16.vlgmr.msra.gmra.mxu2 %v1256_v20 }
 0x4e2   :  { %626 = vmatmul.bf16.vlgmr.msrb.gmra.mxu1 %v426_v23 }
 0x4e3   :  { %1194 = vmatpush.bf16.msrb.mxu1 %v1995_v5 }
 0x4e5   :  { %v1254_v29 = vpop.f32.mrf.mxu3 }
 0x4e7   :  { %v424_v31 = vpop.f32.mrf.mxu1  ;;  %1195 = vmatpush.bf16.msrb.mxu1 %v1994_v44 }
 0x4eb   :  { %1196 = vmatpush.bf16.msrb.mxu1 %v1993_v6 }
 0x4ed   :  { %v1347_v27 = vpop.f32.mrf.mxu3 }
 0x4ee   :  { %v1348_v35 = vadd.f32 %v2490_v4, %v1347_v27  ;;  %v2003_v4 = vld [vmem:[%s2733_s7 + $0x78] sm:$0xff]  ;;  %v2018_v27 = vld [vmem:[%s2733_s7 + $0xf0] sm:$0xff] }
 0x4ef   :  { %1133 = vmatpush.bf16.msrb.mxu0 %v2003_v4  ;;  %1197 = vmatpush.bf16.msrb.mxu1 %v1992_v7  ;;  %v2014_v4 = vld [vmem:[%s2733_s7 + $0xd0] sm:$0xff] }
 0x4f0   :  { %v1351_v36 = vsel %vm391_vm2, %v1348_v35, -inf }
 0x4f1   :  { %1352 = vmax.xlane.f32.xlu2 %v1351_v36 }
 0x4f3   :  { %1134 = vmatpush.bf16.msrb.mxu0 %v2002_v42  ;;  %1198 = vmatpush.bf16.msrb.mxu1 %v1991_v50 }
 0x4f5   :  { %v1349_v39 = vpop.f32.mrf.mxu3 }
 0x4f7   :  { %1135 = vmatpush.bf16.msrb.mxu0 %v2001_v43  ;;  %1199 = vmatpush.bf16.msrb.mxu1 %v1990_v9  ;;  %v2013_v43 = vld [vmem:[%s2733_s7 + $0xc8] sm:$0xff] }
 0x4f9   :  { %976 = vadd.xlane.f32.xlu2 %v975_v41  ;;  %v2015_v41 = vld [vmem:[%s2733_s7 + $0xd8] sm:$0xff] }
 0x4fb   :  { %1136 = vmatpush.bf16.msrb.mxu0 %v2000_v45 }
 0x4ff   :  { %1137 = vmatpush.bf16.msrb.mxu0 %v1999_v46 }
 0x503   :  { %1138 = vmatpush.bf16.msrb.mxu0 %v1998_v47 }
 0x507   :  { %1139 = vmatpush.bf16.msrb.mxu0 %v1997_v49 }
 0x50b   :  { %1140 = vmatpush.bf16.msrb.mxu0 %v1996_v24 }
 0x54f   :  { %v804_v48 = vpop.f32.mrf.mxu0 }
 0x550   :  { %v808_v40 = vpack.c.bf16 %v804_v48, %v804_v48  ;;  %v2012_v48 = vld [vmem:[%s2733_s7 + $0xc0] sm:$0xff] }
 0x552   :  { %881 = vmatmul.bf16.vlgmr.msra.gmra.mxu1 %v808_v40 }
 0x557   :  { %v806_v51 = vpop.f32.mrf.mxu0 }
 0x55f   :  { %v627_v52 = vpop.f32.mrf.mxu1 }
 0x560   :  { %v628_v8 = vadd.f32 %v627_v52, %v2483_v28  ;;  %v1989_v28 = vld [vmem:[%s2733_s7 + $0x8] sm:$0xff] }
 0x561   :  { %1200 = vmatpush.bf16.msrb.mxu1 %v1989_v28  ;;  %v1931_v28 = vld [vmem:[%s2726_s0 + $0x8] sm:$0xff]  ;;  %s2128_s0 = smov [#allocation4]  }
 0x562   :  { %v758_v10 = vadd.f32 %v2485_v2, %v628_v8  ;;  %v1988_v2 = vld [vmem:[%s2733_s7] sm:$0xff] }
 0x563   :  { %v2623_v53 = vpop.f32.mrf.mxu2 }
 0x564   :  { %v1353_v54 = vpop.xlane.xlu2 %1352 }
 0x565   :  { %v1354_v55 = vsub.f32 %v1348_v35, %v1353_v54  ;;  %1201 = vmatpush.bf16.msrb.mxu1 %v1988_v2  ;;  %v2017_v35 = vld [vmem:[%s2733_s7 + $0xe8] sm:$0xff]  ;;  %v2028_v2 = vld [vmem:[%s2734_s8] ss:$0 sm:$0xff]  ;;  %s1539_s8 = sshll.u32 %s2128_s0, 4  ;;  %s1540_s8 = int_to_ptr.vmem [resolvable:$true] %s1539_s8 }
 0x567   :  { %v1355_v56 = vmul.f32 1.442695, %v1354_v55  ;;  %v629_v57 = vpop.f32.mrf.mxu1 }
 0x569   :  { %2059 = vpow2.f32 %v1355_v56  ;;  %1449 = vmatpush.bf16.msra.mxu1 %v2019_v32 }
 0x56b   :  { %v1332_v58 = vpop.f32.mrf.mxu2 }
 0x56c   :  { %v977_v59 = vpop.xlane.xlu2 %976 }
 0x56d   :  { %2061 = vrcp.f32 %v977_v59  ;;  %1450 = vmatpush.bf16.msra.mxu1 %v2018_v27 }
 0x56f   :  { %v2060_v61 = vpop.eup %2059 }
 0x570   :  { %v1357_v18 = vsel %vm391_vm2, %v2060_v61, 0.0 }
 0x571   :  { %1358 = vadd.xlane.f32.xlu0 %v1357_v18  ;;  %1451 = vmatpush.bf16.msra.mxu1 %v2017_v35 }
 0x573   :  { %v2062_v62 = vpop.eup %2061 }
 0x574   :  { %v979_v0 = vmul.f32 %v2062_v62, %v2058_v37  ;;  %v2016_v37 = vld [vmem:[%s2733_s7 + $0xe0] sm:$0xff] }
 0x575   :  { %1452 = vmatpush.bf16.msra.mxu1 %v2016_v37 }
 0x576   :  { %v980_v1 = vpack.c.bf16 %v979_v0, %v979_v0 }
 0x578   :  { %982 = vst.msk [vmem:[#allocation4 + $0x4] sm:$0xf] %vm404_vm3, %v980_v1  ;;  %1799 = vmatmul.msk.bf16.vlgmr.msra.gmra.mxu0 %vm391_vm2, %v980_v1 }
 0x579   :  { %1378 = vmatpush.bf16.msra.mxu0 %v1369_v3  ;;  %1453 = vmatpush.bf16.msra.mxu1 %v2015_v41 }
 0x57d   :  { %1454 = vmatpush.bf16.msra.mxu1 %v2014_v4 }
 0x581   :  { %1455 = vmatpush.bf16.msra.mxu1 %v2013_v43 }
 0x585   :  { %1456 = vmatpush.bf16.msra.mxu1 %v2012_v48 }
 0x588   :  { %1141 = vmatmul.bf16.vlgmr.msrb.gmra.mxu0 %v1068_v60 }
 0x5cf   :  { %v882_v11 = vpop.f32.mrf.mxu1 }
 0x5d0   :  { %v886_v13 = vadd.f32 %v882_v11, %v758_v10 }
 0x5d2   :  { %v888_v15 = vadd.f32 %v887_v12, %v886_v13 }
 0x5d4   :  { %v893_v16 = vadd.f32 %v2027_v14, %v888_v15 }
 0x5d6   :  { %v894_v17 = vsel %vm98_vm0, %v893_v16, 0.0 }
 0x5d7   :  { %v884_v19 = vpop.f32.mrf.mxu1  ;;  %895 = vadd.xlane.f32.xlu1 %v894_v17 }
 0x5e4   :  { %v1359_v20 = vpop.xlane.xlu0 %1358 }
 0x5e5   :  { %2063 = vrcp.f32 %v1359_v20 }
 0x5e6   :  { %2065 = vrcp.f32 %v2127_v33 }
 0x5eb   :  { %v2064_v21 = vpop.eup %2063 }
 0x5ec   :  { %v1361_v22 = vmul.f32 %v2064_v21, %v2060_v61  ;;  %v2066_v34 = vpop.eup %2065 }
 0x5ed   :  { %v898_v36 = vmul.f32 32.0, %v2066_v34  ;;  %vm902_vm4 = vweird.f32 %v2066_v34 }
 0x5ee   :  { %v1362_v23 = vpack.c.bf16 %v1361_v22, %v1361_v22  ;;  %v2030_v22 = vld [vmem:[%s2736_s10] ss:$0 sm:$0xff] }
 0x5ef   :  { %v899_v39 = vsub.f32 1.0, %v898_v36 }
 0x5f0   :  { %1364 = vst.msk [vmem:[#allocation4 + $0x1c] sm:$0xf] %vm404_vm3, %v1362_v23  ;;  %1898 = vmatmul.msk.bf16.vlgmr.msra.gmra.mxu0 %vm391_vm2, %v1362_v23 }
 0x5f1   :  { %v900_v26 = vmul.f32 %v2066_v34, %v899_v39  ;;  %1547 = dma.vmem_to_hbm [thread:$0]  %s1540_s8, 512, %s1542_s16, [#allocation5], %s2129_s17, %s2129_s17, %s2130_s18  }
 0x5f3   :  { %v901_v42 = vadd.f32 %v2066_v34, %v900_v26 }
 0x5f5   :  { %v998_v25 = vpop.f32.mrf.mxu0  ;;  %v2689_v45 = vsel %vm902_vm4, %v2066_v34, %v901_v42 }
 0x5f6   :  { %v1002_v29 = vpack.c.bf16 %v998_v25, %v998_v25 }
 0x5f8   :  { %1202 = vmatmul.bf16.vlgmr.msrb.gmra.mxu1 %v1002_v29 }
 0x5fd   :  { %v1000_v30 = vpop.f32.mrf.mxu0 }
 0x605   :  { %v1142_v31 = vpop.f32.mrf.mxu0 }
 0x60d   :  { %v1144_v38 = vpop.f32.mrf.mxu0 }
 0x64a   :  { %v896_v46 = vpop.xlane.xlu1 %895 }
 0x64b   :  { %v904_v47 = vmul.f32 %v2689_v45, %v896_v46 }
 0x64d   :  { %v905_v40 = vsub.f32 %v893_v16, %v904_v47 }
 0x64f   :  { %v906_v49 = vmul.f32 %v905_v40, %v905_v40 }
 0x651   :  { %v907_v24 = vsel %vm98_vm0, %v906_v49, 0.0 }
 0x652   :  { %908 = vadd.xlane.f32.xlu0 %v907_v24 }
 0x66d   :  { %v1380_v51 = vpop.f32.mrf.mxu0 }
 0x66e   :  { %v1384_v52 = vpack.c.bf16 %v1380_v51, %v1380_v51 }
 0x670   :  { %1457 = vmatmul.bf16.vlgmr.msra.gmra.mxu1 %v1384_v52 }
 0x675   :  { %v1203_v54 = vpop.f32.mrf.mxu1  ;;  %v1382_v55 = vpop.f32.mrf.mxu0 }
 0x676   :  { %v1204_v50 = vadd.f32 %v1203_v54, %v1142_v31 }
 0x678   :  { %v1334_v12 = vadd.f32 %v2623_v53, %v1204_v50  ;;  %v2029_v53 = vld [vmem:[%s2735_s9] ss:$0 sm:$0xff] }
 0x67d   :  { %v1205_v56 = vpop.f32.mrf.mxu1 }
 0x6c5   :  { %v909_v57 = vpop.xlane.xlu0 %908 }
 0x6c6   :  { %v910_v58 = vmul.f32 0.032258064, %v909_v57 }
 0x6c8   :  { %2067 = vrsqrt.f32 %v910_v58  ;;  %vm918_vm5 = vcmp.eq.f32.partialorder %v910_v58, inf  ;;  %v921_v3 = vand.u32 2147483648, %v910_v58  ;;  %vm920_vm6 = vcmp.eq.f32.partialorder %v910_v58, 0.0 }
 0x6ce   :  { %v2068_v59 = vpop.eup %2067 }
 0x6cf   :  { %v912_v61 = vmul.f32 %v2068_v59, %v910_v58 }
 0x6d1   :  { %v913_v18 = vmul.f32 %v2068_v59, %v912_v61 }
 0x6d3   :  { %v914_v62 = vmul.f32 0.5, %v913_v18  ;;  %v2032_v18 = vld [vmem:[%s2736_s10] ss:$0 sm:$0xff] }
 0x6d5   :  { %v915_v63 = vsub.f32 1.5, %v914_v62 }
 0x6d7   :  { %v916_v0 = vmul.f32 %v2068_v59, %v915_v63 }
 0x6d9   :  { %v917_v1 = vmul.f32 %v916_v0, %v910_v58 }
 0x6db   :  { %v919_v60 = vsel %vm918_vm5, %v910_v58, %v917_v1  ;;  %v2031_v58 = vld [vmem:[%s2735_s9] ss:$0 sm:$0xff]  ;;  %s2133_s9 = smov 8  }
 0x6dc   :  { %v922_v5 = vsel %vm920_vm6, %v921_v3, %v919_v60 }
 0x6dd   :  { %v923_v44 = vadd.f32 0.001, %v922_v5 }
 0x6df   :  { %2069 = vrcp.f32 %v923_v44  ;;  %v935_v9 = vand.u32 2147483648, %v923_v44  ;;  %v933_v11 = vand.u32 2147483647, %v923_v44  ;;  %vm929_vm8 = vweird.f32 %v923_v44 }
 0x6e1   :  { %v936_v15 = vor.u32 1.1754944e-38, %v935_v9  ;;  %vm934_vm10 = vcmp.eq.f32.partialorder %v933_v11, 8.507059e+37 }
 0x6e5   :  { %v2070_v6 = vpop.eup %2069 }
 0x6e6   :  { %v925_v7 = vmul.f32 %v2070_v6, %v923_v44  ;;  %vm930_vm7 = vweird.f32 %v2070_v6 }
 0x6e7   :  { %vm931_vm9 = vmor %vm929_vm8, %vm930_vm7 }
 0x6e8   :  { %v926_v8 = vsub.f32 1.0, %v925_v7 }
 0x6ea   :  { %v927_v10 = vmul.f32 %v2070_v6, %v926_v8 }
 0x6ec   :  { %v928_v13 = vadd.f32 %v2070_v6, %v927_v10 }
 0x6ed   :  { %v1458_v14 = vpop.f32.mrf.mxu1 }
 0x6ee   :  { %v1462_v16 = vadd.f32 %v1458_v14, %v1334_v12  ;;  %v932_v17 = vsel %vm931_vm9, %v2070_v6, %v928_v13 }
 0x6ef   :  { %v937_v19 = vsel %vm934_vm10, %v936_v15, %v932_v17 }
 0x6f0   :  { %v1465_v20 = vadd.f32 %v1931_v28, %v1462_v16  ;;  %v940_v21 = vmul.f32 %v937_v19, %v905_v40 }
 0x6f2   :  { %v1470_v23 = vadd.f32 %v2028_v2, %v1465_v20  ;;  %v944_v25 = vmul.f32 %v2029_v53, %v940_v21 }
 0x6f4   :  { %v1471_v29 = vsel %vm98_vm0, %v1470_v23, 0.0  ;;  %v949_v30 = vadd.f32 %v2030_v22, %v944_v25 }
 0x6f5   :  { %1472 = vadd.xlane.f32.xlu2 %v1471_v29  ;;  %v1460_v31 = vpop.f32.mrf.mxu1 }
 0x6f6   :  { %950 = vst.msk [vmem:[#allocation2] sm:$0xff] %vm98_vm0, %v949_v30 }
 0x768   :  { %v1473_v38 = vpop.xlane.xlu2 %1472 }
 0x769   :  { %v1474_v32 = vmul.f32 %v1473_v38, %v2689_v45 }
 0x76b   :  { %v1475_v33 = vsub.f32 %v1470_v23, %v1474_v32 }
 0x76d   :  { %v1476_v27 = vmul.f32 %v1475_v33, %v1475_v33 }
 0x76f   :  { %v1477_v35 = vsel %vm98_vm0, %v1476_v27, 0.0 }
 0x770   :  { %1478 = vadd.xlane.f32.xlu1 %v1477_v35 }
 0x7e3   :  { %v1479_v34 = vpop.xlane.xlu1 %1478 }
 0x7e4   :  { %v1480_v36 = vmul.f32 0.032258064, %v1479_v34 }
 0x7e6   :  { %2071 = vrsqrt.f32 %v1480_v36  ;;  %vm1488_vm11 = vcmp.eq.f32.partialorder %v1480_v36, inf  ;;  %v1491_v45 = vand.u32 2147483648, %v1480_v36  ;;  %vm1490_vm12 = vcmp.eq.f32.partialorder %v1480_v36, 0.0 }
 0x7ec   :  { %v2072_v37 = vpop.eup %2071 }
 0x7ed   :  { %v1482_v39 = vmul.f32 %v2072_v37, %v1480_v36 }
 0x7ef   :  { %v1483_v41 = vmul.f32 %v2072_v37, %v1482_v39 }
 0x7f1   :  { %v1484_v26 = vmul.f32 0.5, %v1483_v41 }
 0x7f3   :  { %v1485_v4 = vsub.f32 1.5, %v1484_v26 }
 0x7f5   :  { %v1486_v42 = vmul.f32 %v2072_v37, %v1485_v4 }
 0x7f7   :  { %v1487_v43 = vmul.f32 %v1486_v42, %v1480_v36 }
 0x7f9   :  { %v1489_v46 = vsel %vm1488_vm11, %v1480_v36, %v1487_v43 }
 0x7fa   :  { %v1492_v47 = vsel %vm1490_vm12, %v1491_v45, %v1489_v46 }
 0x7fb   :  { %v1493_v48 = vadd.f32 0.001, %v1492_v47 }
 0x7fd   :  { %2073 = vrcp.f32 %v1493_v48  ;;  %v1505_v51 = vand.u32 2147483648, %v1493_v48  ;;  %v1503_v54 = vand.u32 2147483647, %v1493_v48  ;;  %vm1499_vm14 = vweird.f32 %v1493_v48 }
 0x7ff   :  { %v1506_v56 = vor.u32 1.1754944e-38, %v1505_v51  ;;  %vm1504_vm1 = vcmp.eq.f32.partialorder %v1503_v54, 8.507059e+37 }
 0x803   :  { %v2074_v40 = vpop.eup %2073 }
 0x804   :  { %v1495_v49 = vmul.f32 %v2074_v40, %v1493_v48  ;;  %vm1500_vm13 = vweird.f32 %v2074_v40 }
 0x805   :  { %vm1501_vm15 = vmor %vm1499_vm14, %vm1500_vm13 }
 0x806   :  { %v1496_v24 = vsub.f32 1.0, %v1495_v49 }
 0x808   :  { %v1497_v52 = vmul.f32 %v2074_v40, %v1496_v24 }
 0x80a   :  { %v1498_v55 = vadd.f32 %v2074_v40, %v1497_v52 }
 0x80c   :  { %v1502_v57 = vsel %vm1501_vm15, %v2074_v40, %v1498_v55 }
 0x80d   :  { %v1507_v59 = vsel %vm1504_vm1, %v1506_v56, %v1502_v57 }
 0x80e   :  { %v1510_v61 = vmul.f32 %v1507_v59, %v1475_v33 }
 0x810   :  { %v1514_v62 = vmul.f32 %v2031_v58, %v1510_v61 }
 0x812   :  { %v1519_v63 = vadd.f32 %v2032_v18, %v1514_v62 }
 0x814   :  { %1521 = vst.msk [vmem:[#allocation2 + $0x8] sm:$0xff] %vm98_vm0, %v1519_v63 }
 0x815   :  { %1534 = dma.vmem_to_hbm [thread:$0]  %s1527_s22, 256, %s1529_s2, [#allocation3], %s2132_s3, %s2132_s3, %s2133_s9  }
 0x816   :  { %2123 = dma.done.wait [#allocation3], 256  }
 0x817   :  { %2124 = vsyncadd [#allocation3], 4294967040 }
 0x818   :  { %2125 = dma.done.wait [#allocation5], 512  }
 0x819   :  { %2126 = vsyncadd [#allocation5], 4294966784 }
 0x81a   :  { %1556 = vsyncpa [#allocation3], 1 }
 0x81b   :  { %1557 = vsyncpa [#allocation5], 1 }

</bundles_post_ra>
